<compile_context>
chip_gen: v7x
topology: tpu7x:2x2x1
jax: 0.10.0
libtpu: 0.0.40
codegen_flags: <defaults>
</compile_context>

<pallas_src>
import functools

import jax
import jax.numpy as jnp
from jax.experimental import pallas as pl
from jax.experimental.pallas import tpu as pltpu

# Sigmoid_CRM parameters (fixed in My_Model.__init__)
A = 0.6
B = 0.9
K_MAX = 256.0
K_MIN = 1e-6
NEG_SLOPE = 0.01  # LeakyReLU

# Network config from default hparams:
#   conv1: 3 -> 2 channels, 3x3, pad 1, bias ; LeakyReLU(0.01)
#   conv2: 2 -> 1 channel,  3x3, pad 1, bias
C_IN, C_MID, C_OUT = 3, 2, 1


def _conv_taps(x, left_ok, right_ok, lw):
    """Nine zero-padded 3x3 taps: taps[ky][kx][y, l] = x[y+ky-1, l+kx-1].

    dx (lane) shifts use pltpu.roll (XLU) + image-border masks; dy (sublane)
    shifts use a zero-row concatenate (the zero fill is the SAME-conv border).
    """
    zero_row = jnp.zeros((1, lw), jnp.float32)
    # lane shifts: kx = 0 -> x[., l-1],  kx = 2 -> x[., l+1]
    xl = jnp.where(left_ok, pltpu.roll(x, 1, axis=1), 0.0)
    xr = jnp.where(right_ok, pltpu.roll(x, lw - 1, axis=1), 0.0)
    cols = (xl, x, xr)
    taps = []
    for ky in range(3):
        row = []
        for kx in range(3):
            c = cols[kx]
            if ky == 0:      # x[y-1, .]
                t = jnp.concatenate([zero_row, c[:-1, :]], axis=0)
            elif ky == 2:    # x[y+1, .]
                t = jnp.concatenate([c[1:, :], zero_row], axis=0)
            else:
                t = c
            row.append(t)
        taps.append(row)
    return taps


def my_model_kernel(w1_ref, b1_ref, w2_ref, b2_ref, p0_ref, p1_ref, k_ref,
                    *, img_w):
    # w1_ref: SMEM f32[2*3*3*3] (OIHW flat), b1_ref: SMEM f32[2]
    # w2_ref: SMEM f32[1*2*3*3] (OIHW flat), b2_ref: SMEM f32[1]
    # p0_ref: VMEM (3, H, LW)    p1_ref / k_ref: VMEM (3, H, LW)
    # LW = (#images packed along lanes) * img_w, possibly zero-padded to 128*k
    _, H, LW = p0_ref.shape

    # image border masks along the packed lane axis (computed once per block)
    lane = jax.lax.broadcasted_iota(jnp.int32, (H, LW), 1)
    col = lane % img_w
    left_ok = col != 0
    right_ok = col != (img_w - 1)

    # ---- e0 = crm.crf_inv(p0) = (a*p0 / (1+a-p0)) ** (1/b), per channel ----
    # exact reciprocal here: e0 feeds the two-conv chain (error amplification);
    # the btf reciprocal below is approx since its error cannot be amplified.
    p0 = [p0_ref[ic] for ic in range(C_IN)]
    e0 = [jnp.power(A * p * pl.reciprocal(1.0 + A - p, approx=False), 1.0 / B)
          for p in p0]

    # ---- conv1 (3 -> 2) + LeakyReLU: taps shared across output channels ----
    acc1 = [jnp.full((H, LW), b1_ref[oc], dtype=jnp.float32)
            for oc in range(C_MID)]
    for ic in range(C_IN):
        taps = _conv_taps(e0[ic], left_ok, right_ok, LW)
        for oc in range(C_MID):
            a = acc1[oc]
            for ky in range(3):
                for kx in range(3):
                    w = w1_ref[((oc * C_IN + ic) * 3 + ky) * 3 + kx]
                    a = a + w * taps[ky][kx]
            acc1[oc] = a
    hidden = [jnp.where(a >= 0.0, a, NEG_SLOPE * a) for a in acc1]

    # ---- conv2 (2 -> 1) ----
    acc2 = jnp.full((H, LW), b2_ref[0], dtype=jnp.float32)
    for ic in range(C_MID):
        taps = _conv_taps(hidden[ic], left_ok, right_ok, LW)
        for ky in range(3):
            for kx in range(3):
                w = w2_ref[(ic * 3 + ky) * 3 + kx]
                acc2 = acc2 + w * taps[ky][kx]

    # ---- K = clamp(K_temp, 1e-6, 256); K**B computed once and shared ----
    K = jnp.clip(acc2, K_MIN, K_MAX)
    kb = jnp.power(K, B)

    # ---- p1 = crm.btf(p0, K) = kb*p0*(1+a) / ((kb-1)*p0 + 1 + a), clamp <=1 ----
    for c in range(3):
        p = p0[c]
        num = kb * p * (1.0 + A)
        den = (kb - 1.0) * p + (1.0 + A)
        p1 = jnp.minimum(num * pl.reciprocal(den, approx=True), 1.0)
        p1_ref[c] = p1
        k_ref[c] = K


def _round_up(x, m):
    return (x + m - 1) // m * m


def my_model_forward(p0, w1, b1, w2, b2):
    """Pallas implementation of My_Model.forward -> (p1, K)."""
    N, C, H, W = p0.shape
    assert C == C_IN
    p0f = p0.astype(jnp.float32)

    # Pick images-per-block NB so each block's lane width is a multiple of 128
    # (unmasked lane-dense stores, native-width rolls).  If impossible, pack
    # the whole batch and zero-pad the lane axis up to a multiple of 128.
    NB = None
    if W % 128 == 0:
        NB = 1
    else:
        for d in range(1, N + 1):
            if N % d == 0 and (d * W) % 128 == 0:
                NB = d
                break

    xp = jnp.transpose(p0f, (1, 2, 0, 3)).reshape(C, H, N * W)
    if NB is not None:
        G = N // NB
        LW = NB * W
    else:
        G = 1
        LW = _round_up(N * W, 128)
        xp = jnp.pad(xp, ((0, 0), (0, 0), (0, LW - N * W)))
    PW = G * LW  # total packed lane width

    smem = pl.BlockSpec(memory_space=pltpu.MemorySpace.SMEM)
    kernel = functools.partial(my_model_kernel, img_w=W)

    p1p, kp = pl.pallas_call(
        kernel,
        out_shape=(jax.ShapeDtypeStruct((3, H, PW), jnp.float32),
                   jax.ShapeDtypeStruct((3, H, PW), jnp.float32)),
        grid_spec=pltpu.PrefetchScalarGridSpec(
            num_scalar_prefetch=0,
            grid=(G,),
            in_specs=[smem, smem, smem, smem,
                      pl.BlockSpec((C_IN, H, LW), lambda g: (0, 0, g))],
            out_specs=[pl.BlockSpec((3, H, LW), lambda g: (0, 0, g)),
                       pl.BlockSpec((3, H, LW), lambda g: (0, 0, g))]),
        compiler_params=pltpu.CompilerParams(
            dimension_semantics=("parallel",),
            vmem_limit_bytes=32 * 1024 * 1024),
    )(w1.reshape(-1).astype(jnp.float32), b1.astype(jnp.float32),
      w2.reshape(-1).astype(jnp.float32), b2.astype(jnp.float32), xp)

    # unpack (3, H, PW) -> (N, 3, H, W), dropping lane padding if any
    p1 = jnp.transpose(p1p[:, :, :N * W].reshape(3, H, N, W), (2, 0, 1, 3))
    K = jnp.transpose(kp[:, :, :N * W].reshape(3, H, N, W), (2, 0, 1, 3))
    return p1, K


def ref_forward(p0, w1, b1, w2, b2):
    """Pure-JAX reference of My_Model.forward for verification."""
    e0 = jnp.power(A * p0 / (1.0 + A - p0), 1.0 / B)
    h = jax.lax.conv_general_dilated(
        e0, w1, (1, 1), "SAME",
        dimension_numbers=("NCHW", "OIHW", "NCHW")) + b1[None, :, None, None]
    h = jnp.where(h >= 0.0, h, NEG_SLOPE * h)
    kt = jax.lax.conv_general_dilated(
        h, w2, (1, 1), "SAME",
        dimension_numbers=("NCHW", "OIHW", "NCHW")) + b2[None, :, None, None]
    K = jnp.clip(kt, K_MIN, K_MAX)
    K3 = jnp.repeat(K, 3, axis=1)
    kb = jnp.power(K3, B)
    p1 = kb * p0 * (1.0 + A) / ((kb - 1.0) * p0 + 1.0 + A)
    return jnp.minimum(p1, 1.0), K3


if __name__ == "__main__":
    key = jax.random.PRNGKey(0)
    k1, k2, k3, k4, k5 = jax.random.split(key, 5)

    N, C, H, W = 2, 3, 16, 16
    # p0 is an image-like input in (0, 1) (a probability/intensity map)
    p0 = jax.random.uniform(k1, (N, C, H, W), jnp.float32,
                            minval=0.05, maxval=0.95)
    # deterministic synthetic conv parameters (shapes from FeatureBlock __init__)
    w1 = 0.2 * jax.random.normal(k2, (C_MID, C_IN, 3, 3), jnp.float32)
    b1 = 0.1 * jax.random.normal(k3, (C_MID,), jnp.float32)
    w2 = 0.2 * jax.random.normal(k4, (C_OUT, C_MID, 3, 3), jnp.float32)
    b2 = 0.1 * jax.random.normal(k5, (C_OUT,), jnp.float32)

    p1, K = my_model_forward(p0, w1, b1, w2, b2)
    jax.block_until_ready((p1, K))

    p1_ref, K_ref = ref_forward(p0, w1, b1, w2, b2)
    assert p1.shape == (N, 3, H, W) and K.shape == (N, 3, H, W)
    assert jnp.allclose(K, K_ref, rtol=2e-3, atol=2e-3), "K mismatch"
    assert jnp.allclose(p1, p1_ref, rtol=2e-3, atol=2e-3), "p1 mismatch"
    print("KERNEL_OK")
</pallas_src>

<mosaic_0001>
module attributes {stable_mosaic.version = 11 : i64} {
  func.func @my_model_kernel(%arg0: i32, %arg1: memref<54xf32, #tpu.memory_space<smem>>, %arg2: memref<2xf32, #tpu.memory_space<smem>>, %arg3: memref<18xf32, #tpu.memory_space<smem>>, %arg4: memref<1xf32, #tpu.memory_space<smem>>, %arg5: memref<3x16x128xf32, #tpu.memory_space<vmem>>, %arg6: memref<3x16x128xf32, #tpu.memory_space<vmem>>, %arg7: memref<3x16x128xf32, #tpu.memory_space<vmem>>) attributes {dimension_semantics = [#tpu.dimension_semantics<parallel>], iteration_bounds = array<i64: 1>, scalar_prefetch = 0 : i64, scratch_operands = 0 : i64, tpu.core_type = #tpu.core_type<tc>, window_params = [{transform_indices = @transform_0, window_bounds = array<i64: 54>}, {transform_indices = @transform_1, window_bounds = array<i64: 2>}, {transform_indices = @transform_2, window_bounds = array<i64: 18>}, {transform_indices = @transform_3, window_bounds = array<i64: 1>}, {transform_indices = @transform_4, window_bounds = array<i64: 3, 16, 128>}, {transform_indices = @transform_5, window_bounds = array<i64: 3, 16, 128>}, {transform_indices = @transform_6, window_bounds = array<i64: 3, 16, 128>}]} {
    %0 = tpu.iota {dimensions = array<i32: 1>} : vector<16x128xi32>
    %c16_i32 = arith.constant 16 : i32
    %c0_i32 = arith.constant 0 : i32
    %1 = arith.cmpi eq, %c16_i32, %c0_i32 : i32
    %c1_i32 = arith.constant 1 : i32
    %2 = arith.select %1, %c1_i32, %c16_i32 : i32
    %3 = vector.broadcast %2 : i32 to vector<16x128xi32>
    %4 = arith.remsi %0, %3 : vector<16x128xi32>
    %c0_i32_0 = arith.constant 0 : i32
    %5 = vector.broadcast %c0_i32_0 : i32 to vector<16x128xi32>
    %6 = arith.cmpi ne, %4, %5 : vector<16x128xi32>
    %c0_i32_1 = arith.constant 0 : i32
    %7 = vector.broadcast %c0_i32_1 : i32 to vector<16x128xi32>
    %8 = arith.cmpi slt, %4, %7 : vector<16x128xi32>
    %c0_i32_2 = arith.constant 0 : i32
    %9 = arith.cmpi slt, %2, %c0_i32_2 : i32
    %10 = vector.broadcast %9 : i1 to vector<16x128xi1>
    %11 = vector.broadcast %10 : vector<16x128xi1> to vector<16x128xi1>
    %12 = arith.xori %8, %11 : vector<16x128xi1>
    %13 = arith.andi %12, %6 : vector<16x128xi1>
    %14 = vector.broadcast %2 : i32 to vector<16x128xi32>
    %15 = arith.addi %4, %14 : vector<16x128xi32>
    %16 = arith.select %13, %15, %4 : vector<16x128xi1>, vector<16x128xi32>
    %c0_i32_3 = arith.constant 0 : i32
    %17 = vector.broadcast %c0_i32_3 : i32 to vector<16x128xi32>
    %18 = arith.cmpi ne, %16, %17 : vector<16x128xi32>
    %c15_i32 = arith.constant 15 : i32
    %19 = vector.broadcast %c15_i32 : i32 to vector<16x128xi32>
    %20 = arith.cmpi ne, %16, %19 : vector<16x128xi32>
    %c0 = arith.constant 0 : index
    %c0_4 = arith.constant 0 : index
    %c0_5 = arith.constant 0 : index
    %21 = vector.load %arg5[%c0, %c0_4, %c0_5] : memref<3x16x128xf32, #tpu.memory_space<vmem>>, vector<1x16x128xf32>
    %22 = vector.shape_cast %21 : vector<1x16x128xf32> to vector<16x128xf32>
    %c1 = arith.constant 1 : index
    %c0_6 = arith.constant 0 : index
    %c0_7 = arith.constant 0 : index
    %23 = vector.load %arg5[%c1, %c0_6, %c0_7] : memref<3x16x128xf32, #tpu.memory_space<vmem>>, vector<1x16x128xf32>
    %24 = vector.shape_cast %23 : vector<1x16x128xf32> to vector<16x128xf32>
    %c2 = arith.constant 2 : index
    %c0_8 = arith.constant 0 : index
    %c0_9 = arith.constant 0 : index
    %25 = vector.load %arg5[%c2, %c0_8, %c0_9] : memref<3x16x128xf32, #tpu.memory_space<vmem>>, vector<1x16x128xf32>
    %26 = vector.shape_cast %25 : vector<1x16x128xf32> to vector<16x128xf32>
    %cst = arith.constant 6.000000e-01 : f32
    %27 = vector.broadcast %cst : f32 to vector<16x128xf32>
    %28 = arith.mulf %27, %22 : vector<16x128xf32>
    %cst_10 = arith.constant 1.600000e+00 : f32
    %29 = vector.broadcast %cst_10 : f32 to vector<16x128xf32>
    %30 = arith.subf %29, %22 : vector<16x128xf32>
    %31 = tpu.reciprocal %30 : vector<16x128xf32> -> vector<16x128xf32>
    %32 = arith.mulf %28, %31 : vector<16x128xf32>
    %cst_11 = arith.constant 1.11111116 : f32
    %33 = vector.broadcast %cst_11 : f32 to vector<16x128xf32>
    %34 = math.powf %32, %33 : vector<16x128xf32>
    %cst_12 = arith.constant 6.000000e-01 : f32
    %35 = vector.broadcast %cst_12 : f32 to vector<16x128xf32>
    %36 = arith.mulf %35, %24 : vector<16x128xf32>
    %cst_13 = arith.constant 1.600000e+00 : f32
    %37 = vector.broadcast %cst_13 : f32 to vector<16x128xf32>
    %38 = arith.subf %37, %24 : vector<16x128xf32>
    %39 = tpu.reciprocal %38 : vector<16x128xf32> -> vector<16x128xf32>
    %40 = arith.mulf %36, %39 : vector<16x128xf32>
    %cst_14 = arith.constant 1.11111116 : f32
    %41 = vector.broadcast %cst_14 : f32 to vector<16x128xf32>
    %42 = math.powf %40, %41 : vector<16x128xf32>
    %cst_15 = arith.constant 6.000000e-01 : f32
    %43 = vector.broadcast %cst_15 : f32 to vector<16x128xf32>
    %44 = arith.mulf %43, %26 : vector<16x128xf32>
    %cst_16 = arith.constant 1.600000e+00 : f32
    %45 = vector.broadcast %cst_16 : f32 to vector<16x128xf32>
    %46 = arith.subf %45, %26 : vector<16x128xf32>
    %47 = tpu.reciprocal %46 : vector<16x128xf32> -> vector<16x128xf32>
    %48 = arith.mulf %44, %47 : vector<16x128xf32>
    %cst_17 = arith.constant 1.11111116 : f32
    %49 = vector.broadcast %cst_17 : f32 to vector<16x128xf32>
    %50 = math.powf %48, %49 : vector<16x128xf32>
    %c0_18 = arith.constant 0 : index
    %51 = memref.load %arg2[%c0_18] : memref<2xf32, #tpu.memory_space<smem>>
    %52 = vector.broadcast %51 : f32 to vector<16x128xf32>
    %c1_19 = arith.constant 1 : index
    %53 = memref.load %arg2[%c1_19] : memref<2xf32, #tpu.memory_space<smem>>
    %54 = vector.broadcast %53 : f32 to vector<16x128xf32>
    %cst_20 = arith.constant 0.000000e+00 : f32
    %55 = vector.broadcast %cst_20 : f32 to vector<1x128xf32>
    %c1_i32_21 = arith.constant 1 : i32
    %56 = tpu.dynamic_rotate %34 by %c1_i32_21 dim 1 : vector<16x128xf32>, i32 -> vector<16x128xf32>
    %cst_22 = arith.constant 0.000000e+00 : f32
    %57 = vector.broadcast %cst_22 : f32 to vector<16x128xf32>
    %58 = arith.select %18, %56, %57 : vector<16x128xi1>, vector<16x128xf32>
    %c127_i32 = arith.constant 127 : i32
    %59 = tpu.dynamic_rotate %34 by %c127_i32 dim 1 : vector<16x128xf32>, i32 -> vector<16x128xf32>
    %cst_23 = arith.constant 0.000000e+00 : f32
    %60 = vector.broadcast %cst_23 : f32 to vector<16x128xf32>
    %61 = arith.select %20, %59, %60 : vector<16x128xi1>, vector<16x128xf32>
    %62 = vector.extract_strided_slice %58 {offsets = [0, 0], sizes = [15, 128], strides = [1, 1]} : vector<16x128xf32> to vector<15x128xf32>
    %63 = tpu.concatenate %55, %62 in 0 : vector<1x128xf32>, vector<15x128xf32> -> vector<16x128xf32>
    %64 = vector.extract_strided_slice %34 {offsets = [0, 0], sizes = [15, 128], strides = [1, 1]} : vector<16x128xf32> to vector<15x128xf32>
    %65 = tpu.concatenate %55, %64 in 0 : vector<1x128xf32>, vector<15x128xf32> -> vector<16x128xf32>
    %66 = vector.extract_strided_slice %61 {offsets = [0, 0], sizes = [15, 128], strides = [1, 1]} : vector<16x128xf32> to vector<15x128xf32>
    %67 = tpu.concatenate %55, %66 in 0 : vector<1x128xf32>, vector<15x128xf32> -> vector<16x128xf32>
    %68 = vector.extract_strided_slice %58 {offsets = [1, 0], sizes = [15, 128], strides = [1, 1]} : vector<16x128xf32> to vector<15x128xf32>
    %69 = tpu.concatenate %68, %55 in 0 : vector<15x128xf32>, vector<1x128xf32> -> vector<16x128xf32>
    %70 = vector.extract_strided_slice %34 {offsets = [1, 0], sizes = [15, 128], strides = [1, 1]} : vector<16x128xf32> to vector<15x128xf32>
    %71 = tpu.concatenate %70, %55 in 0 : vector<15x128xf32>, vector<1x128xf32> -> vector<16x128xf32>
    %72 = vector.extract_strided_slice %61 {offsets = [1, 0], sizes = [15, 128], strides = [1, 1]} : vector<16x128xf32> to vector<15x128xf32>
    %73 = tpu.concatenate %72, %55 in 0 : vector<15x128xf32>, vector<1x128xf32> -> vector<16x128xf32>
    %c0_24 = arith.constant 0 : index
    %74 = memref.load %arg1[%c0_24] : memref<54xf32, #tpu.memory_space<smem>>
    %75 = vector.broadcast %74 : f32 to vector<16x128xf32>
    %76 = arith.mulf %75, %63 : vector<16x128xf32>
    %77 = arith.addf %52, %76 : vector<16x128xf32>
    %c1_25 = arith.constant 1 : index
    %78 = memref.load %arg1[%c1_25] : memref<54xf32, #tpu.memory_space<smem>>
    %79 = vector.broadcast %78 : f32 to vector<16x128xf32>
    %80 = arith.mulf %79, %65 : vector<16x128xf32>
    %81 = arith.addf %77, %80 : vector<16x128xf32>
    %c2_26 = arith.constant 2 : index
    %82 = memref.load %arg1[%c2_26] : memref<54xf32, #tpu.memory_space<smem>>
    %83 = vector.broadcast %82 : f32 to vector<16x128xf32>
    %84 = arith.mulf %83, %67 : vector<16x128xf32>
    %85 = arith.addf %81, %84 : vector<16x128xf32>
    %c3 = arith.constant 3 : index
    %86 = memref.load %arg1[%c3] : memref<54xf32, #tpu.memory_space<smem>>
    %87 = vector.broadcast %86 : f32 to vector<16x128xf32>
    %88 = arith.mulf %87, %58 : vector<16x128xf32>
    %89 = arith.addf %85, %88 : vector<16x128xf32>
    %c4 = arith.constant 4 : index
    %90 = memref.load %arg1[%c4] : memref<54xf32, #tpu.memory_space<smem>>
    %91 = vector.broadcast %90 : f32 to vector<16x128xf32>
    %92 = arith.mulf %91, %34 : vector<16x128xf32>
    %93 = arith.addf %89, %92 : vector<16x128xf32>
    %c5 = arith.constant 5 : index
    %94 = memref.load %arg1[%c5] : memref<54xf32, #tpu.memory_space<smem>>
    %95 = vector.broadcast %94 : f32 to vector<16x128xf32>
    %96 = arith.mulf %95, %61 : vector<16x128xf32>
    %97 = arith.addf %93, %96 : vector<16x128xf32>
    %c6 = arith.constant 6 : index
    %98 = memref.load %arg1[%c6] : memref<54xf32, #tpu.memory_space<smem>>
    %99 = vector.broadcast %98 : f32 to vector<16x128xf32>
    %100 = arith.mulf %99, %69 : vector<16x128xf32>
    %101 = arith.addf %97, %100 : vector<16x128xf32>
    %c7 = arith.constant 7 : index
    %102 = memref.load %arg1[%c7] : memref<54xf32, #tpu.memory_space<smem>>
    %103 = vector.broadcast %102 : f32 to vector<16x128xf32>
    %104 = arith.mulf %103, %71 : vector<16x128xf32>
    %105 = arith.addf %101, %104 : vector<16x128xf32>
    %c8 = arith.constant 8 : index
    %106 = memref.load %arg1[%c8] : memref<54xf32, #tpu.memory_space<smem>>
    %107 = vector.broadcast %106 : f32 to vector<16x128xf32>
    %108 = arith.mulf %107, %73 : vector<16x128xf32>
    %109 = arith.addf %105, %108 : vector<16x128xf32>
    %c27 = arith.constant 27 : index
    %110 = memref.load %arg1[%c27] : memref<54xf32, #tpu.memory_space<smem>>
    %111 = vector.broadcast %110 : f32 to vector<16x128xf32>
    %112 = arith.mulf %111, %63 : vector<16x128xf32>
    %113 = arith.addf %54, %112 : vector<16x128xf32>
    %c28 = arith.constant 28 : index
    %114 = memref.load %arg1[%c28] : memref<54xf32, #tpu.memory_space<smem>>
    %115 = vector.broadcast %114 : f32 to vector<16x128xf32>
    %116 = arith.mulf %115, %65 : vector<16x128xf32>
    %117 = arith.addf %113, %116 : vector<16x128xf32>
    %c29 = arith.constant 29 : index
    %118 = memref.load %arg1[%c29] : memref<54xf32, #tpu.memory_space<smem>>
    %119 = vector.broadcast %118 : f32 to vector<16x128xf32>
    %120 = arith.mulf %119, %67 : vector<16x128xf32>
    %121 = arith.addf %117, %120 : vector<16x128xf32>
    %c30 = arith.constant 30 : index
    %122 = memref.load %arg1[%c30] : memref<54xf32, #tpu.memory_space<smem>>
    %123 = vector.broadcast %122 : f32 to vector<16x128xf32>
    %124 = arith.mulf %123, %58 : vector<16x128xf32>
    %125 = arith.addf %121, %124 : vector<16x128xf32>
    %c31 = arith.constant 31 : index
    %126 = memref.load %arg1[%c31] : memref<54xf32, #tpu.memory_space<smem>>
    %127 = vector.broadcast %126 : f32 to vector<16x128xf32>
    %128 = arith.mulf %127, %34 : vector<16x128xf32>
    %129 = arith.addf %125, %128 : vector<16x128xf32>
    %c32 = arith.constant 32 : index
    %130 = memref.load %arg1[%c32] : memref<54xf32, #tpu.memory_space<smem>>
    %131 = vector.broadcast %130 : f32 to vector<16x128xf32>
    %132 = arith.mulf %131, %61 : vector<16x128xf32>
    %133 = arith.addf %129, %132 : vector<16x128xf32>
    %c33 = arith.constant 33 : index
    %134 = memref.load %arg1[%c33] : memref<54xf32, #tpu.memory_space<smem>>
    %135 = vector.broadcast %134 : f32 to vector<16x128xf32>
    %136 = arith.mulf %135, %69 : vector<16x128xf32>
    %137 = arith.addf %133, %136 : vector<16x128xf32>
    %c34 = arith.constant 34 : index
    %138 = memref.load %arg1[%c34] : memref<54xf32, #tpu.memory_space<smem>>
    %139 = vector.broadcast %138 : f32 to vector<16x128xf32>
    %140 = arith.mulf %139, %71 : vector<16x128xf32>
    %141 = arith.addf %137, %140 : vector<16x128xf32>
    %c35 = arith.constant 35 : index
    %142 = memref.load %arg1[%c35] : memref<54xf32, #tpu.memory_space<smem>>
    %143 = vector.broadcast %142 : f32 to vector<16x128xf32>
    %144 = arith.mulf %143, %73 : vector<16x128xf32>
    %145 = arith.addf %141, %144 : vector<16x128xf32>
    %cst_27 = arith.constant 0.000000e+00 : f32
    %146 = vector.broadcast %cst_27 : f32 to vector<1x128xf32>
    %c1_i32_28 = arith.constant 1 : i32
    %147 = tpu.dynamic_rotate %42 by %c1_i32_28 dim 1 : vector<16x128xf32>, i32 -> vector<16x128xf32>
    %cst_29 = arith.constant 0.000000e+00 : f32
    %148 = vector.broadcast %cst_29 : f32 to vector<16x128xf32>
    %149 = arith.select %18, %147, %148 : vector<16x128xi1>, vector<16x128xf32>
    %c127_i32_30 = arith.constant 127 : i32
    %150 = tpu.dynamic_rotate %42 by %c127_i32_30 dim 1 : vector<16x128xf32>, i32 -> vector<16x128xf32>
    %cst_31 = arith.constant 0.000000e+00 : f32
    %151 = vector.broadcast %cst_31 : f32 to vector<16x128xf32>
    %152 = arith.select %20, %150, %151 : vector<16x128xi1>, vector<16x128xf32>
    %153 = vector.extract_strided_slice %149 {offsets = [0, 0], sizes = [15, 128], strides = [1, 1]} : vector<16x128xf32> to vector<15x128xf32>
    %154 = tpu.concatenate %146, %153 in 0 : vector<1x128xf32>, vector<15x128xf32> -> vector<16x128xf32>
    %155 = vector.extract_strided_slice %42 {offsets = [0, 0], sizes = [15, 128], strides = [1, 1]} : vector<16x128xf32> to vector<15x128xf32>
    %156 = tpu.concatenate %146, %155 in 0 : vector<1x128xf32>, vector<15x128xf32> -> vector<16x128xf32>
    %157 = vector.extract_strided_slice %152 {offsets = [0, 0], sizes = [15, 128], strides = [1, 1]} : vector<16x128xf32> to vector<15x128xf32>
    %158 = tpu.concatenate %146, %157 in 0 : vector<1x128xf32>, vector<15x128xf32> -> vector<16x128xf32>
    %159 = vector.extract_strided_slice %149 {offsets = [1, 0], sizes = [15, 128], strides = [1, 1]} : vector<16x128xf32> to vector<15x128xf32>
    %160 = tpu.concatenate %159, %146 in 0 : vector<15x128xf32>, vector<1x128xf32> -> vector<16x128xf32>
    %161 = vector.extract_strided_slice %42 {offsets = [1, 0], sizes = [15, 128], strides = [1, 1]} : vector<16x128xf32> to vector<15x128xf32>
    %162 = tpu.concatenate %161, %146 in 0 : vector<15x128xf32>, vector<1x128xf32> -> vector<16x128xf32>
    %163 = vector.extract_strided_slice %152 {offsets = [1, 0], sizes = [15, 128], strides = [1, 1]} : vector<16x128xf32> to vector<15x128xf32>
    %164 = tpu.concatenate %163, %146 in 0 : vector<15x128xf32>, vector<1x128xf32> -> vector<16x128xf32>
    %c9 = arith.constant 9 : index
    %165 = memref.load %arg1[%c9] : memref<54xf32, #tpu.memory_space<smem>>
    %166 = vector.broadcast %165 : f32 to vector<16x128xf32>
    %167 = arith.mulf %166, %154 : vector<16x128xf32>
    %168 = arith.addf %109, %167 : vector<16x128xf32>
    %c10 = arith.constant 10 : index
    %169 = memref.load %arg1[%c10] : memref<54xf32, #tpu.memory_space<smem>>
    %170 = vector.broadcast %169 : f32 to vector<16x128xf32>
    %171 = arith.mulf %170, %156 : vector<16x128xf32>
    %172 = arith.addf %168, %171 : vector<16x128xf32>
    %c11 = arith.constant 11 : index
    %173 = memref.load %arg1[%c11] : memref<54xf32, #tpu.memory_space<smem>>
    %174 = vector.broadcast %173 : f32 to vector<16x128xf32>
    %175 = arith.mulf %174, %158 : vector<16x128xf32>
    %176 = arith.addf %172, %175 : vector<16x128xf32>
    %c12 = arith.constant 12 : index
    %177 = memref.load %arg1[%c12] : memref<54xf32, #tpu.memory_space<smem>>
    %178 = vector.broadcast %177 : f32 to vector<16x128xf32>
    %179 = arith.mulf %178, %149 : vector<16x128xf32>
    %180 = arith.addf %176, %179 : vector<16x128xf32>
    %c13 = arith.constant 13 : index
    %181 = memref.load %arg1[%c13] : memref<54xf32, #tpu.memory_space<smem>>
    %182 = vector.broadcast %181 : f32 to vector<16x128xf32>
    %183 = arith.mulf %182, %42 : vector<16x128xf32>
    %184 = arith.addf %180, %183 : vector<16x128xf32>
    %c14 = arith.constant 14 : index
    %185 = memref.load %arg1[%c14] : memref<54xf32, #tpu.memory_space<smem>>
    %186 = vector.broadcast %185 : f32 to vector<16x128xf32>
    %187 = arith.mulf %186, %152 : vector<16x128xf32>
    %188 = arith.addf %184, %187 : vector<16x128xf32>
    %c15 = arith.constant 15 : index
    %189 = memref.load %arg1[%c15] : memref<54xf32, #tpu.memory_space<smem>>
    %190 = vector.broadcast %189 : f32 to vector<16x128xf32>
    %191 = arith.mulf %190, %160 : vector<16x128xf32>
    %192 = arith.addf %188, %191 : vector<16x128xf32>
    %c16 = arith.constant 16 : index
    %193 = memref.load %arg1[%c16] : memref<54xf32, #tpu.memory_space<smem>>
    %194 = vector.broadcast %193 : f32 to vector<16x128xf32>
    %195 = arith.mulf %194, %162 : vector<16x128xf32>
    %196 = arith.addf %192, %195 : vector<16x128xf32>
    %c17 = arith.constant 17 : index
    %197 = memref.load %arg1[%c17] : memref<54xf32, #tpu.memory_space<smem>>
    %198 = vector.broadcast %197 : f32 to vector<16x128xf32>
    %199 = arith.mulf %198, %164 : vector<16x128xf32>
    %200 = arith.addf %196, %199 : vector<16x128xf32>
    %c36 = arith.constant 36 : index
    %201 = memref.load %arg1[%c36] : memref<54xf32, #tpu.memory_space<smem>>
    %202 = vector.broadcast %201 : f32 to vector<16x128xf32>
    %203 = arith.mulf %202, %154 : vector<16x128xf32>
    %204 = arith.addf %145, %203 : vector<16x128xf32>
    %c37 = arith.constant 37 : index
    %205 = memref.load %arg1[%c37] : memref<54xf32, #tpu.memory_space<smem>>
    %206 = vector.broadcast %205 : f32 to vector<16x128xf32>
    %207 = arith.mulf %206, %156 : vector<16x128xf32>
    %208 = arith.addf %204, %207 : vector<16x128xf32>
    %c38 = arith.constant 38 : index
    %209 = memref.load %arg1[%c38] : memref<54xf32, #tpu.memory_space<smem>>
    %210 = vector.broadcast %209 : f32 to vector<16x128xf32>
    %211 = arith.mulf %210, %158 : vector<16x128xf32>
    %212 = arith.addf %208, %211 : vector<16x128xf32>
    %c39 = arith.constant 39 : index
    %213 = memref.load %arg1[%c39] : memref<54xf32, #tpu.memory_space<smem>>
    %214 = vector.broadcast %213 : f32 to vector<16x128xf32>
    %215 = arith.mulf %214, %149 : vector<16x128xf32>
    %216 = arith.addf %212, %215 : vector<16x128xf32>
    %c40 = arith.constant 40 : index
    %217 = memref.load %arg1[%c40] : memref<54xf32, #tpu.memory_space<smem>>
    %218 = vector.broadcast %217 : f32 to vector<16x128xf32>
    %219 = arith.mulf %218, %42 : vector<16x128xf32>
    %220 = arith.addf %216, %219 : vector<16x128xf32>
    %c41 = arith.constant 41 : index
    %221 = memref.load %arg1[%c41] : memref<54xf32, #tpu.memory_space<smem>>
    %222 = vector.broadcast %221 : f32 to vector<16x128xf32>
    %223 = arith.mulf %222, %152 : vector<16x128xf32>
    %224 = arith.addf %220, %223 : vector<16x128xf32>
    %c42 = arith.constant 42 : index
    %225 = memref.load %arg1[%c42] : memref<54xf32, #tpu.memory_space<smem>>
    %226 = vector.broadcast %225 : f32 to vector<16x128xf32>
    %227 = arith.mulf %226, %160 : vector<16x128xf32>
    %228 = arith.addf %224, %227 : vector<16x128xf32>
    %c43 = arith.constant 43 : index
    %229 = memref.load %arg1[%c43] : memref<54xf32, #tpu.memory_space<smem>>
    %230 = vector.broadcast %229 : f32 to vector<16x128xf32>
    %231 = arith.mulf %230, %162 : vector<16x128xf32>
    %232 = arith.addf %228, %231 : vector<16x128xf32>
    %c44 = arith.constant 44 : index
    %233 = memref.load %arg1[%c44] : memref<54xf32, #tpu.memory_space<smem>>
    %234 = vector.broadcast %233 : f32 to vector<16x128xf32>
    %235 = arith.mulf %234, %164 : vector<16x128xf32>
    %236 = arith.addf %232, %235 : vector<16x128xf32>
    %cst_32 = arith.constant 0.000000e+00 : f32
    %237 = vector.broadcast %cst_32 : f32 to vector<1x128xf32>
    %c1_i32_33 = arith.constant 1 : i32
    %238 = tpu.dynamic_rotate %50 by %c1_i32_33 dim 1 : vector<16x128xf32>, i32 -> vector<16x128xf32>
    %cst_34 = arith.constant 0.000000e+00 : f32
    %239 = vector.broadcast %cst_34 : f32 to vector<16x128xf32>
    %240 = arith.select %18, %238, %239 : vector<16x128xi1>, vector<16x128xf32>
    %c127_i32_35 = arith.constant 127 : i32
    %241 = tpu.dynamic_rotate %50 by %c127_i32_35 dim 1 : vector<16x128xf32>, i32 -> vector<16x128xf32>
    %cst_36 = arith.constant 0.000000e+00 : f32
    %242 = vector.broadcast %cst_36 : f32 to vector<16x128xf32>
    %243 = arith.select %20, %241, %242 : vector<16x128xi1>, vector<16x128xf32>
    %244 = vector.extract_strided_slice %240 {offsets = [0, 0], sizes = [15, 128], strides = [1, 1]} : vector<16x128xf32> to vector<15x128xf32>
    %245 = tpu.concatenate %237, %244 in 0 : vector<1x128xf32>, vector<15x128xf32> -> vector<16x128xf32>
    %246 = vector.extract_strided_slice %50 {offsets = [0, 0], sizes = [15, 128], strides = [1, 1]} : vector<16x128xf32> to vector<15x128xf32>
    %247 = tpu.concatenate %237, %246 in 0 : vector<1x128xf32>, vector<15x128xf32> -> vector<16x128xf32>
    %248 = vector.extract_strided_slice %243 {offsets = [0, 0], sizes = [15, 128], strides = [1, 1]} : vector<16x128xf32> to vector<15x128xf32>
    %249 = tpu.concatenate %237, %248 in 0 : vector<1x128xf32>, vector<15x128xf32> -> vector<16x128xf32>
    %250 = vector.extract_strided_slice %240 {offsets = [1, 0], sizes = [15, 128], strides = [1, 1]} : vector<16x128xf32> to vector<15x128xf32>
    %251 = tpu.concatenate %250, %237 in 0 : vector<15x128xf32>, vector<1x128xf32> -> vector<16x128xf32>
    %252 = vector.extract_strided_slice %50 {offsets = [1, 0], sizes = [15, 128], strides = [1, 1]} : vector<16x128xf32> to vector<15x128xf32>
    %253 = tpu.concatenate %252, %237 in 0 : vector<15x128xf32>, vector<1x128xf32> -> vector<16x128xf32>
    %254 = vector.extract_strided_slice %243 {offsets = [1, 0], sizes = [15, 128], strides = [1, 1]} : vector<16x128xf32> to vector<15x128xf32>
    %255 = tpu.concatenate %254, %237 in 0 : vector<15x128xf32>, vector<1x128xf32> -> vector<16x128xf32>
    %c18 = arith.constant 18 : index
    %256 = memref.load %arg1[%c18] : memref<54xf32, #tpu.memory_space<smem>>
    %257 = vector.broadcast %256 : f32 to vector<16x128xf32>
    %258 = arith.mulf %257, %245 : vector<16x128xf32>
    %259 = arith.addf %200, %258 : vector<16x128xf32>
    %c19 = arith.constant 19 : index
    %260 = memref.load %arg1[%c19] : memref<54xf32, #tpu.memory_space<smem>>
    %261 = vector.broadcast %260 : f32 to vector<16x128xf32>
    %262 = arith.mulf %261, %247 : vector<16x128xf32>
    %263 = arith.addf %259, %262 : vector<16x128xf32>
    %c20 = arith.constant 20 : index
    %264 = memref.load %arg1[%c20] : memref<54xf32, #tpu.memory_space<smem>>
    %265 = vector.broadcast %264 : f32 to vector<16x128xf32>
    %266 = arith.mulf %265, %249 : vector<16x128xf32>
    %267 = arith.addf %263, %266 : vector<16x128xf32>
    %c21 = arith.constant 21 : index
    %268 = memref.load %arg1[%c21] : memref<54xf32, #tpu.memory_space<smem>>
    %269 = vector.broadcast %268 : f32 to vector<16x128xf32>
    %270 = arith.mulf %269, %240 : vector<16x128xf32>
    %271 = arith.addf %267, %270 : vector<16x128xf32>
    %c22 = arith.constant 22 : index
    %272 = memref.load %arg1[%c22] : memref<54xf32, #tpu.memory_space<smem>>
    %273 = vector.broadcast %272 : f32 to vector<16x128xf32>
    %274 = arith.mulf %273, %50 : vector<16x128xf32>
    %275 = arith.addf %271, %274 : vector<16x128xf32>
    %c23 = arith.constant 23 : index
    %276 = memref.load %arg1[%c23] : memref<54xf32, #tpu.memory_space<smem>>
    %277 = vector.broadcast %276 : f32 to vector<16x128xf32>
    %278 = arith.mulf %277, %243 : vector<16x128xf32>
    %279 = arith.addf %275, %278 : vector<16x128xf32>
    %c24 = arith.constant 24 : index
    %280 = memref.load %arg1[%c24] : memref<54xf32, #tpu.memory_space<smem>>
    %281 = vector.broadcast %280 : f32 to vector<16x128xf32>
    %282 = arith.mulf %281, %251 : vector<16x128xf32>
    %283 = arith.addf %279, %282 : vector<16x128xf32>
    %c25 = arith.constant 25 : index
    %284 = memref.load %arg1[%c25] : memref<54xf32, #tpu.memory_space<smem>>
    %285 = vector.broadcast %284 : f32 to vector<16x128xf32>
    %286 = arith.mulf %285, %253 : vector<16x128xf32>
    %287 = arith.addf %283, %286 : vector<16x128xf32>
    %c26 = arith.constant 26 : index
    %288 = memref.load %arg1[%c26] : memref<54xf32, #tpu.memory_space<smem>>
    %289 = vector.broadcast %288 : f32 to vector<16x128xf32>
    %290 = arith.mulf %289, %255 : vector<16x128xf32>
    %291 = arith.addf %287, %290 : vector<16x128xf32>
    %c45 = arith.constant 45 : index
    %292 = memref.load %arg1[%c45] : memref<54xf32, #tpu.memory_space<smem>>
    %293 = vector.broadcast %292 : f32 to vector<16x128xf32>
    %294 = arith.mulf %293, %245 : vector<16x128xf32>
    %295 = arith.addf %236, %294 : vector<16x128xf32>
    %c46 = arith.constant 46 : index
    %296 = memref.load %arg1[%c46] : memref<54xf32, #tpu.memory_space<smem>>
    %297 = vector.broadcast %296 : f32 to vector<16x128xf32>
    %298 = arith.mulf %297, %247 : vector<16x128xf32>
    %299 = arith.addf %295, %298 : vector<16x128xf32>
    %c47 = arith.constant 47 : index
    %300 = memref.load %arg1[%c47] : memref<54xf32, #tpu.memory_space<smem>>
    %301 = vector.broadcast %300 : f32 to vector<16x128xf32>
    %302 = arith.mulf %301, %249 : vector<16x128xf32>
    %303 = arith.addf %299, %302 : vector<16x128xf32>
    %c48 = arith.constant 48 : index
    %304 = memref.load %arg1[%c48] : memref<54xf32, #tpu.memory_space<smem>>
    %305 = vector.broadcast %304 : f32 to vector<16x128xf32>
    %306 = arith.mulf %305, %240 : vector<16x128xf32>
    %307 = arith.addf %303, %306 : vector<16x128xf32>
    %c49 = arith.constant 49 : index
    %308 = memref.load %arg1[%c49] : memref<54xf32, #tpu.memory_space<smem>>
    %309 = vector.broadcast %308 : f32 to vector<16x128xf32>
    %310 = arith.mulf %309, %50 : vector<16x128xf32>
    %311 = arith.addf %307, %310 : vector<16x128xf32>
    %c50 = arith.constant 50 : index
    %312 = memref.load %arg1[%c50] : memref<54xf32, #tpu.memory_space<smem>>
    %313 = vector.broadcast %312 : f32 to vector<16x128xf32>
    %314 = arith.mulf %313, %243 : vector<16x128xf32>
    %315 = arith.addf %311, %314 : vector<16x128xf32>
    %c51 = arith.constant 51 : index
    %316 = memref.load %arg1[%c51] : memref<54xf32, #tpu.memory_space<smem>>
    %317 = vector.broadcast %316 : f32 to vector<16x128xf32>
    %318 = arith.mulf %317, %251 : vector<16x128xf32>
    %319 = arith.addf %315, %318 : vector<16x128xf32>
    %c52 = arith.constant 52 : index
    %320 = memref.load %arg1[%c52] : memref<54xf32, #tpu.memory_space<smem>>
    %321 = vector.broadcast %320 : f32 to vector<16x128xf32>
    %322 = arith.mulf %321, %253 : vector<16x128xf32>
    %323 = arith.addf %319, %322 : vector<16x128xf32>
    %c53 = arith.constant 53 : index
    %324 = memref.load %arg1[%c53] : memref<54xf32, #tpu.memory_space<smem>>
    %325 = vector.broadcast %324 : f32 to vector<16x128xf32>
    %326 = arith.mulf %325, %255 : vector<16x128xf32>
    %327 = arith.addf %323, %326 : vector<16x128xf32>
    %cst_37 = arith.constant 0.000000e+00 : f32
    %328 = vector.broadcast %cst_37 : f32 to vector<16x128xf32>
    %329 = arith.cmpf oge, %291, %328 : vector<16x128xf32>
    %cst_38 = arith.constant 0.00999999977 : f32
    %330 = vector.broadcast %cst_38 : f32 to vector<16x128xf32>
    %331 = arith.mulf %330, %291 : vector<16x128xf32>
    %332 = arith.select %329, %291, %331 : vector<16x128xi1>, vector<16x128xf32>
    %cst_39 = arith.constant 0.000000e+00 : f32
    %333 = vector.broadcast %cst_39 : f32 to vector<16x128xf32>
    %334 = arith.cmpf oge, %327, %333 : vector<16x128xf32>
    %cst_40 = arith.constant 0.00999999977 : f32
    %335 = vector.broadcast %cst_40 : f32 to vector<16x128xf32>
    %336 = arith.mulf %335, %327 : vector<16x128xf32>
    %337 = arith.select %334, %327, %336 : vector<16x128xi1>, vector<16x128xf32>
    %c0_41 = arith.constant 0 : index
    %338 = memref.load %arg4[%c0_41] : memref<1xf32, #tpu.memory_space<smem>>
    %339 = vector.broadcast %338 : f32 to vector<16x128xf32>
    %cst_42 = arith.constant 0.000000e+00 : f32
    %340 = vector.broadcast %cst_42 : f32 to vector<1x128xf32>
    %c1_i32_43 = arith.constant 1 : i32
    %341 = tpu.dynamic_rotate %332 by %c1_i32_43 dim 1 : vector<16x128xf32>, i32 -> vector<16x128xf32>
    %cst_44 = arith.constant 0.000000e+00 : f32
    %342 = vector.broadcast %cst_44 : f32 to vector<16x128xf32>
    %343 = arith.select %18, %341, %342 : vector<16x128xi1>, vector<16x128xf32>
    %c127_i32_45 = arith.constant 127 : i32
    %344 = tpu.dynamic_rotate %332 by %c127_i32_45 dim 1 : vector<16x128xf32>, i32 -> vector<16x128xf32>
    %cst_46 = arith.constant 0.000000e+00 : f32
    %345 = vector.broadcast %cst_46 : f32 to vector<16x128xf32>
    %346 = arith.select %20, %344, %345 : vector<16x128xi1>, vector<16x128xf32>
    %347 = vector.extract_strided_slice %343 {offsets = [0, 0], sizes = [15, 128], strides = [1, 1]} : vector<16x128xf32> to vector<15x128xf32>
    %348 = tpu.concatenate %340, %347 in 0 : vector<1x128xf32>, vector<15x128xf32> -> vector<16x128xf32>
    %349 = vector.extract_strided_slice %332 {offsets = [0, 0], sizes = [15, 128], strides = [1, 1]} : vector<16x128xf32> to vector<15x128xf32>
    %350 = tpu.concatenate %340, %349 in 0 : vector<1x128xf32>, vector<15x128xf32> -> vector<16x128xf32>
    %351 = vector.extract_strided_slice %346 {offsets = [0, 0], sizes = [15, 128], strides = [1, 1]} : vector<16x128xf32> to vector<15x128xf32>
    %352 = tpu.concatenate %340, %351 in 0 : vector<1x128xf32>, vector<15x128xf32> -> vector<16x128xf32>
    %353 = vector.extract_strided_slice %343 {offsets = [1, 0], sizes = [15, 128], strides = [1, 1]} : vector<16x128xf32> to vector<15x128xf32>
    %354 = tpu.concatenate %353, %340 in 0 : vector<15x128xf32>, vector<1x128xf32> -> vector<16x128xf32>
    %355 = vector.extract_strided_slice %332 {offsets = [1, 0], sizes = [15, 128], strides = [1, 1]} : vector<16x128xf32> to vector<15x128xf32>
    %356 = tpu.concatenate %355, %340 in 0 : vector<15x128xf32>, vector<1x128xf32> -> vector<16x128xf32>
    %357 = vector.extract_strided_slice %346 {offsets = [1, 0], sizes = [15, 128], strides = [1, 1]} : vector<16x128xf32> to vector<15x128xf32>
    %358 = tpu.concatenate %357, %340 in 0 : vector<15x128xf32>, vector<1x128xf32> -> vector<16x128xf32>
    %c0_47 = arith.constant 0 : index
    %359 = memref.load %arg3[%c0_47] : memref<18xf32, #tpu.memory_space<smem>>
    %360 = vector.broadcast %359 : f32 to vector<16x128xf32>
    %361 = arith.mulf %360, %348 : vector<16x128xf32>
    %362 = arith.addf %339, %361 : vector<16x128xf32>
    %c1_48 = arith.constant 1 : index
    %363 = memref.load %arg3[%c1_48] : memref<18xf32, #tpu.memory_space<smem>>
    %364 = vector.broadcast %363 : f32 to vector<16x128xf32>
    %365 = arith.mulf %364, %350 : vector<16x128xf32>
    %366 = arith.addf %362, %365 : vector<16x128xf32>
    %c2_49 = arith.constant 2 : index
    %367 = memref.load %arg3[%c2_49] : memref<18xf32, #tpu.memory_space<smem>>
    %368 = vector.broadcast %367 : f32 to vector<16x128xf32>
    %369 = arith.mulf %368, %352 : vector<16x128xf32>
    %370 = arith.addf %366, %369 : vector<16x128xf32>
    %c3_50 = arith.constant 3 : index
    %371 = memref.load %arg3[%c3_50] : memref<18xf32, #tpu.memory_space<smem>>
    %372 = vector.broadcast %371 : f32 to vector<16x128xf32>
    %373 = arith.mulf %372, %343 : vector<16x128xf32>
    %374 = arith.addf %370, %373 : vector<16x128xf32>
    %c4_51 = arith.constant 4 : index
    %375 = memref.load %arg3[%c4_51] : memref<18xf32, #tpu.memory_space<smem>>
    %376 = vector.broadcast %375 : f32 to vector<16x128xf32>
    %377 = arith.mulf %376, %332 : vector<16x128xf32>
    %378 = arith.addf %374, %377 : vector<16x128xf32>
    %c5_52 = arith.constant 5 : index
    %379 = memref.load %arg3[%c5_52] : memref<18xf32, #tpu.memory_space<smem>>
    %380 = vector.broadcast %379 : f32 to vector<16x128xf32>
    %381 = arith.mulf %380, %346 : vector<16x128xf32>
    %382 = arith.addf %378, %381 : vector<16x128xf32>
    %c6_53 = arith.constant 6 : index
    %383 = memref.load %arg3[%c6_53] : memref<18xf32, #tpu.memory_space<smem>>
    %384 = vector.broadcast %383 : f32 to vector<16x128xf32>
    %385 = arith.mulf %384, %354 : vector<16x128xf32>
    %386 = arith.addf %382, %385 : vector<16x128xf32>
    %c7_54 = arith.constant 7 : index
    %387 = memref.load %arg3[%c7_54] : memref<18xf32, #tpu.memory_space<smem>>
    %388 = vector.broadcast %387 : f32 to vector<16x128xf32>
    %389 = arith.mulf %388, %356 : vector<16x128xf32>
    %390 = arith.addf %386, %389 : vector<16x128xf32>
    %c8_55 = arith.constant 8 : index
    %391 = memref.load %arg3[%c8_55] : memref<18xf32, #tpu.memory_space<smem>>
    %392 = vector.broadcast %391 : f32 to vector<16x128xf32>
    %393 = arith.mulf %392, %358 : vector<16x128xf32>
    %394 = arith.addf %390, %393 : vector<16x128xf32>
    %cst_56 = arith.constant 0.000000e+00 : f32
    %395 = vector.broadcast %cst_56 : f32 to vector<1x128xf32>
    %c1_i32_57 = arith.constant 1 : i32
    %396 = tpu.dynamic_rotate %337 by %c1_i32_57 dim 1 : vector<16x128xf32>, i32 -> vector<16x128xf32>
    %cst_58 = arith.constant 0.000000e+00 : f32
    %397 = vector.broadcast %cst_58 : f32 to vector<16x128xf32>
    %398 = arith.select %18, %396, %397 : vector<16x128xi1>, vector<16x128xf32>
    %c127_i32_59 = arith.constant 127 : i32
    %399 = tpu.dynamic_rotate %337 by %c127_i32_59 dim 1 : vector<16x128xf32>, i32 -> vector<16x128xf32>
    %cst_60 = arith.constant 0.000000e+00 : f32
    %400 = vector.broadcast %cst_60 : f32 to vector<16x128xf32>
    %401 = arith.select %20, %399, %400 : vector<16x128xi1>, vector<16x128xf32>
    %402 = vector.extract_strided_slice %398 {offsets = [0, 0], sizes = [15, 128], strides = [1, 1]} : vector<16x128xf32> to vector<15x128xf32>
    %403 = tpu.concatenate %395, %402 in 0 : vector<1x128xf32>, vector<15x128xf32> -> vector<16x128xf32>
    %404 = vector.extract_strided_slice %337 {offsets = [0, 0], sizes = [15, 128], strides = [1, 1]} : vector<16x128xf32> to vector<15x128xf32>
    %405 = tpu.concatenate %395, %404 in 0 : vector<1x128xf32>, vector<15x128xf32> -> vector<16x128xf32>
    %406 = vector.extract_strided_slice %401 {offsets = [0, 0], sizes = [15, 128], strides = [1, 1]} : vector<16x128xf32> to vector<15x128xf32>
    %407 = tpu.concatenate %395, %406 in 0 : vector<1x128xf32>, vector<15x128xf32> -> vector<16x128xf32>
    %408 = vector.extract_strided_slice %398 {offsets = [1, 0], sizes = [15, 128], strides = [1, 1]} : vector<16x128xf32> to vector<15x128xf32>
    %409 = tpu.concatenate %408, %395 in 0 : vector<15x128xf32>, vector<1x128xf32> -> vector<16x128xf32>
    %410 = vector.extract_strided_slice %337 {offsets = [1, 0], sizes = [15, 128], strides = [1, 1]} : vector<16x128xf32> to vector<15x128xf32>
    %411 = tpu.concatenate %410, %395 in 0 : vector<15x128xf32>, vector<1x128xf32> -> vector<16x128xf32>
    %412 = vector.extract_strided_slice %401 {offsets = [1, 0], sizes = [15, 128], strides = [1, 1]} : vector<16x128xf32> to vector<15x128xf32>
    %413 = tpu.concatenate %412, %395 in 0 : vector<15x128xf32>, vector<1x128xf32> -> vector<16x128xf32>
    %c9_61 = arith.constant 9 : index
    %414 = memref.load %arg3[%c9_61] : memref<18xf32, #tpu.memory_space<smem>>
    %415 = vector.broadcast %414 : f32 to vector<16x128xf32>
    %416 = arith.mulf %415, %403 : vector<16x128xf32>
    %417 = arith.addf %394, %416 : vector<16x128xf32>
    %c10_62 = arith.constant 10 : index
    %418 = memref.load %arg3[%c10_62] : memref<18xf32, #tpu.memory_space<smem>>
    %419 = vector.broadcast %418 : f32 to vector<16x128xf32>
    %420 = arith.mulf %419, %405 : vector<16x128xf32>
    %421 = arith.addf %417, %420 : vector<16x128xf32>
    %c11_63 = arith.constant 11 : index
    %422 = memref.load %arg3[%c11_63] : memref<18xf32, #tpu.memory_space<smem>>
    %423 = vector.broadcast %422 : f32 to vector<16x128xf32>
    %424 = arith.mulf %423, %407 : vector<16x128xf32>
    %425 = arith.addf %421, %424 : vector<16x128xf32>
    %c12_64 = arith.constant 12 : index
    %426 = memref.load %arg3[%c12_64] : memref<18xf32, #tpu.memory_space<smem>>
    %427 = vector.broadcast %426 : f32 to vector<16x128xf32>
    %428 = arith.mulf %427, %398 : vector<16x128xf32>
    %429 = arith.addf %425, %428 : vector<16x128xf32>
    %c13_65 = arith.constant 13 : index
    %430 = memref.load %arg3[%c13_65] : memref<18xf32, #tpu.memory_space<smem>>
    %431 = vector.broadcast %430 : f32 to vector<16x128xf32>
    %432 = arith.mulf %431, %337 : vector<16x128xf32>
    %433 = arith.addf %429, %432 : vector<16x128xf32>
    %c14_66 = arith.constant 14 : index
    %434 = memref.load %arg3[%c14_66] : memref<18xf32, #tpu.memory_space<smem>>
    %435 = vector.broadcast %434 : f32 to vector<16x128xf32>
    %436 = arith.mulf %435, %401 : vector<16x128xf32>
    %437 = arith.addf %433, %436 : vector<16x128xf32>
    %c15_67 = arith.constant 15 : index
    %438 = memref.load %arg3[%c15_67] : memref<18xf32, #tpu.memory_space<smem>>
    %439 = vector.broadcast %438 : f32 to vector<16x128xf32>
    %440 = arith.mulf %439, %409 : vector<16x128xf32>
    %441 = arith.addf %437, %440 : vector<16x128xf32>
    %c16_68 = arith.constant 16 : index
    %442 = memref.load %arg3[%c16_68] : memref<18xf32, #tpu.memory_space<smem>>
    %443 = vector.broadcast %442 : f32 to vector<16x128xf32>
    %444 = arith.mulf %443, %411 : vector<16x128xf32>
    %445 = arith.addf %441, %444 : vector<16x128xf32>
    %c17_69 = arith.constant 17 : index
    %446 = memref.load %arg3[%c17_69] : memref<18xf32, #tpu.memory_space<smem>>
    %447 = vector.broadcast %446 : f32 to vector<16x128xf32>
    %448 = arith.mulf %447, %413 : vector<16x128xf32>
    %449 = arith.addf %445, %448 : vector<16x128xf32>
    %cst_70 = arith.constant 9.99999997E-7 : f32
    %cst_71 = arith.constant 2.560000e+02 : f32
    %450 = vector.broadcast %cst_70 : f32 to vector<16x128xf32>
    %451 = arith.maximumf %450, %449 : vector<16x128xf32>
    %452 = vector.broadcast %cst_71 : f32 to vector<16x128xf32>
    %453 = arith.minimumf %452, %451 : vector<16x128xf32>
    %cst_72 = arith.constant 0.899999976 : f32
    %454 = vector.broadcast %cst_72 : f32 to vector<16x128xf32>
    %455 = math.powf %453, %454 : vector<16x128xf32>
    %456 = arith.mulf %455, %22 : vector<16x128xf32>
    %cst_73 = arith.constant 1.600000e+00 : f32
    %457 = vector.broadcast %cst_73 : f32 to vector<16x128xf32>
    %458 = arith.mulf %456, %457 : vector<16x128xf32>
    %cst_74 = arith.constant 1.000000e+00 : f32
    %459 = vector.broadcast %cst_74 : f32 to vector<16x128xf32>
    %460 = arith.subf %455, %459 : vector<16x128xf32>
    %461 = arith.mulf %460, %22 : vector<16x128xf32>
    %cst_75 = arith.constant 1.600000e+00 : f32
    %462 = vector.broadcast %cst_75 : f32 to vector<16x128xf32>
    %463 = arith.addf %461, %462 : vector<16x128xf32>
    %464 = tpu.reciprocal %463 {approx = true} : vector<16x128xf32> -> vector<16x128xf32>
    %465 = arith.mulf %458, %464 : vector<16x128xf32>
    %cst_76 = arith.constant 1.000000e+00 : f32
    %466 = vector.broadcast %cst_76 : f32 to vector<16x128xf32>
    %467 = arith.minimumf %465, %466 : vector<16x128xf32>
    %c0_77 = arith.constant 0 : index
    %c0_78 = arith.constant 0 : index
    %c0_79 = arith.constant 0 : index
    %468 = vector.load %arg6[%c0_77, %c0_78, %c0_79] : memref<3x16x128xf32, #tpu.memory_space<vmem>>, vector<1x16x128xf32>
    %469 = vector.shape_cast %468 : vector<1x16x128xf32> to vector<16x128xf32>
    %470 = vector.shape_cast %467 : vector<16x128xf32> to vector<1x16x128xf32>
    tpu.vector_store %arg6[%c0_77, %c0_78, %c0_79], %470 {strides = array<i32>} : memref<3x16x128xf32, #tpu.memory_space<vmem>>, vector<1x16x128xf32>,
    %c0_80 = arith.constant 0 : index
    %c0_81 = arith.constant 0 : index
    %c0_82 = arith.constant 0 : index
    %471 = vector.load %arg7[%c0_80, %c0_81, %c0_82] : memref<3x16x128xf32, #tpu.memory_space<vmem>>, vector<1x16x128xf32>
    %472 = vector.shape_cast %471 : vector<1x16x128xf32> to vector<16x128xf32>
    %473 = vector.shape_cast %453 : vector<16x128xf32> to vector<1x16x128xf32>
    tpu.vector_store %arg7[%c0_80, %c0_81, %c0_82], %473 {strides = array<i32>} : memref<3x16x128xf32, #tpu.memory_space<vmem>>, vector<1x16x128xf32>,
    %474 = arith.mulf %455, %24 : vector<16x128xf32>
    %cst_83 = arith.constant 1.600000e+00 : f32
    %475 = vector.broadcast %cst_83 : f32 to vector<16x128xf32>
    %476 = arith.mulf %474, %475 : vector<16x128xf32>
    %cst_84 = arith.constant 1.000000e+00 : f32
    %477 = vector.broadcast %cst_84 : f32 to vector<16x128xf32>
    %478 = arith.subf %455, %477 : vector<16x128xf32>
    %479 = arith.mulf %478, %24 : vector<16x128xf32>
    %cst_85 = arith.constant 1.600000e+00 : f32
    %480 = vector.broadcast %cst_85 : f32 to vector<16x128xf32>
    %481 = arith.addf %479, %480 : vector<16x128xf32>
    %482 = tpu.reciprocal %481 {approx = true} : vector<16x128xf32> -> vector<16x128xf32>
    %483 = arith.mulf %476, %482 : vector<16x128xf32>
    %cst_86 = arith.constant 1.000000e+00 : f32
    %484 = vector.broadcast %cst_86 : f32 to vector<16x128xf32>
    %485 = arith.minimumf %483, %484 : vector<16x128xf32>
    %c1_87 = arith.constant 1 : index
    %c0_88 = arith.constant 0 : index
    %c0_89 = arith.constant 0 : index
    %486 = vector.load %arg6[%c1_87, %c0_88, %c0_89] : memref<3x16x128xf32, #tpu.memory_space<vmem>>, vector<1x16x128xf32>
    %487 = vector.shape_cast %486 : vector<1x16x128xf32> to vector<16x128xf32>
    %488 = vector.shape_cast %485 : vector<16x128xf32> to vector<1x16x128xf32>
    tpu.vector_store %arg6[%c1_87, %c0_88, %c0_89], %488 {strides = array<i32>} : memref<3x16x128xf32, #tpu.memory_space<vmem>>, vector<1x16x128xf32>,
    %c1_90 = arith.constant 1 : index
    %c0_91 = arith.constant 0 : index
    %c0_92 = arith.constant 0 : index
    %489 = vector.load %arg7[%c1_90, %c0_91, %c0_92] : memref<3x16x128xf32, #tpu.memory_space<vmem>>, vector<1x16x128xf32>
    %490 = vector.shape_cast %489 : vector<1x16x128xf32> to vector<16x128xf32>
    %491 = vector.shape_cast %453 : vector<16x128xf32> to vector<1x16x128xf32>
    tpu.vector_store %arg7[%c1_90, %c0_91, %c0_92], %491 {strides = array<i32>} : memref<3x16x128xf32, #tpu.memory_space<vmem>>, vector<1x16x128xf32>,
    %492 = arith.mulf %455, %26 : vector<16x128xf32>
    %cst_93 = arith.constant 1.600000e+00 : f32
    %493 = vector.broadcast %cst_93 : f32 to vector<16x128xf32>
    %494 = arith.mulf %492, %493 : vector<16x128xf32>
    %cst_94 = arith.constant 1.000000e+00 : f32
    %495 = vector.broadcast %cst_94 : f32 to vector<16x128xf32>
    %496 = arith.subf %455, %495 : vector<16x128xf32>
    %497 = arith.mulf %496, %26 : vector<16x128xf32>
    %cst_95 = arith.constant 1.600000e+00 : f32
    %498 = vector.broadcast %cst_95 : f32 to vector<16x128xf32>
    %499 = arith.addf %497, %498 : vector<16x128xf32>
    %500 = tpu.reciprocal %499 {approx = true} : vector<16x128xf32> -> vector<16x128xf32>
    %501 = arith.mulf %494, %500 : vector<16x128xf32>
    %cst_96 = arith.constant 1.000000e+00 : f32
    %502 = vector.broadcast %cst_96 : f32 to vector<16x128xf32>
    %503 = arith.minimumf %501, %502 : vector<16x128xf32>
    %c2_97 = arith.constant 2 : index
    %c0_98 = arith.constant 0 : index
    %c0_99 = arith.constant 0 : index
    %504 = vector.load %arg6[%c2_97, %c0_98, %c0_99] : memref<3x16x128xf32, #tpu.memory_space<vmem>>, vector<1x16x128xf32>
    %505 = vector.shape_cast %504 : vector<1x16x128xf32> to vector<16x128xf32>
    %506 = vector.shape_cast %503 : vector<16x128xf32> to vector<1x16x128xf32>
    tpu.vector_store %arg6[%c2_97, %c0_98, %c0_99], %506 {strides = array<i32>} : memref<3x16x128xf32, #tpu.memory_space<vmem>>, vector<1x16x128xf32>,
    %c2_100 = arith.constant 2 : index
    %c0_101 = arith.constant 0 : index
    %c0_102 = arith.constant 0 : index
    %507 = vector.load %arg7[%c2_100, %c0_101, %c0_102] : memref<3x16x128xf32, #tpu.memory_space<vmem>>, vector<1x16x128xf32>
    %508 = vector.shape_cast %507 : vector<1x16x128xf32> to vector<16x128xf32>
    %509 = vector.shape_cast %453 : vector<16x128xf32> to vector<1x16x128xf32>
    tpu.vector_store %arg7[%c2_100, %c0_101, %c0_102], %509 {strides = array<i32>} : memref<3x16x128xf32, #tpu.memory_space<vmem>>, vector<1x16x128xf32>,
    return
  }
  func.func @transform_0(%arg0: i32) -> i32 {
    %c0_i32 = arith.constant 0 : i32
    %c0_i32_0 = arith.constant 0 : i32
    return %c0_i32 : i32
  }
  func.func @transform_1(%arg0: i32) -> i32 {
    %c0_i32 = arith.constant 0 : i32
    %c0_i32_0 = arith.constant 0 : i32
    return %c0_i32 : i32
  }
  func.func @transform_2(%arg0: i32) -> i32 {
    %c0_i32 = arith.constant 0 : i32
    %c0_i32_0 = arith.constant 0 : i32
    return %c0_i32 : i32
  }
  func.func @transform_3(%arg0: i32) -> i32 {
    %c0_i32 = arith.constant 0 : i32
    %c0_i32_0 = arith.constant 0 : i32
    return %c0_i32 : i32
  }
  func.func @transform_4(%arg0: i32) -> (i32, i32, i32) {
    %c0_i32 = arith.constant 0 : i32
    %c0_i32_0 = arith.constant 0 : i32
    %c0_i32_1 = arith.constant 0 : i32
    return %c0_i32, %c0_i32_0, %arg0 : i32, i32, i32
  }
  func.func @transform_5(%arg0: i32) -> (i32, i32, i32) {
    %c0_i32 = arith.constant 0 : i32
    %c0_i32_0 = arith.constant 0 : i32
    %c0_i32_1 = arith.constant 0 : i32
    return %c0_i32, %c0_i32_0, %arg0 : i32, i32, i32
  }
  func.func @transform_6(%arg0: i32) -> (i32, i32, i32) {
    %c0_i32 = arith.constant 0 : i32
    %c0_i32_0 = arith.constant 0 : i32
    %c0_i32_1 = arith.constant 0 : i32
    return %c0_i32, %c0_i32_0, %arg0 : i32, i32, i32
  }
}

</mosaic_0001>

<bundles_post_ra>
// kernel: tpu_custom_call.1
= control target key start
LH: loop header
LB: loop body
LE: loop exit
PB: predicated region body
PF: predicated region fallthrough
CT: control target
= control target key end

     0   :  { %s2433_s0 = inlined_call_operand.vmem [shape: f32[54], index: 0, kind: input, shape index: {}]   ;;  %s2434_s1 = inlined_call_operand.vmem [shape: f32[2], index: 1, kind: input, shape index: {}]   ;;  %s2435_s2 = inlined_call_operand.vmem [shape: f32[18], index: 2, kind: input, shape index: {}]   ;;  %s2436_s3 = inlined_call_operand.<no memory space> [shape: f32[1], index: 3, kind: input, shape index: {}]   ;;  %s2437_s4 = inlined_call_operand.hbm [shape: f32[3,16,128], index: 4, kind: input, shape index: {}]   ;;  %s2438_s5 = inlined_call_operand.hbm [shape: f32[3,16,128], index: 5, kind: output, shape index: {0}]   ;;  %s2439_s6 = inlined_call_operand.hbm [shape: f32[3,16,128], index: 6, kind: output, shape index: {1}]  }
   0x1   :  { %2489 = sst [smem:[#allocation39_spill]] %s2436_s3 }
   0x2   :  { %2490 = sst [smem:[#allocation40_spill]] %s2438_s5 }
   0x3   :  { %2491 = sst [smem:[#allocation41_spill]] %s2439_s6 }
   0x4   :  { %13 = vsyncpa [#allocation6], 0 }
   0x5   :  { %14 = vsyncpa [#allocation8], 0 }
   0x6   :  { %15 = vsyncpa [#allocation4], 0 }
   0x7   :  { %16 = vsyncpa [#allocation5], 0  ;;  %s34_s23 = sshll.u32 %s2434_s1, 4  ;;  %s35_s23 = int_to_ptr.vmem [resolvable:$true] %s34_s23 }
   0x8   :  { %17 = vsyncpa [#allocation13], 0  ;;  %s24_s26 = sshll.u32 %s2433_s0, 4  ;;  %s1305_s27 = scalar_lea.vmem %s35_s23, 16  ;;  %s25_s26 = int_to_ptr.vmem [resolvable:$true] %s24_s26 }
   0x9   :  { %p1306_p0 = scmp.ne.s32.totalorder %s35_s23, %s1305_s27  ;;  %p1310_p1 = scmp.lt.s32.totalorder %s35_s23, %s35_s23 }
   0xa   :  { %p1311_p2 = scmp.lt.s32.totalorder %s1305_s27, %s1305_s27 }
   0xc   :  { %p1312_p3 = por %p1311_p2, %p1310_p1 }
   0xe   :  { %p1313_p4 = pnand %p1312_p3, %p1306_p0 }
  0x10   :  { %1316 = shalt.err (!%p1313_p4)
}
  0x11   :  { %s1417_s28 = smov [#allocation7]   ;;  %s1317_s29 = scalar_lea.vmem %s25_s26, 16 }
  0x12   :  { %37 = dma.vmem_to_smem %s35_s23, 16, %s1417_s28, [#allocation8]  }
  0x13   :  { %p1318_p5 = scmp.ne.s32.totalorder %s25_s26, %s1317_s29  ;;  %p1322_p6 = scmp.lt.s32.totalorder %s25_s26, %s25_s26 }
  0x14   :  { %p1323_p7 = scmp.lt.s32.totalorder %s1317_s29, %s1317_s29 }
  0x16   :  { %p1324_p8 = por %p1323_p7, %p1322_p6 }
  0x18   :  { %p1325_p9 = pnand %p1324_p8, %p1318_p5 }
  0x1a   :  { %1328 = shalt.err (!%p1325_p9)
}
  0x1b   :  { %s1418_s1 = smov [#allocation3]   ;;  %s44_s7 = sshll.u32 %s2435_s2, 4  ;;  %s45_s7 = int_to_ptr.vmem [resolvable:$true] %s44_s7 }
  0x1c   :  { %27 = dma.vmem_to_smem %s25_s26, 16, %s1418_s1, [#allocation6]  }
  0x1d   :  { %s1329_s8 = scalar_lea.vmem %s45_s7, 16  ;;  %p1334_p11 = scmp.lt.s32.totalorder %s45_s7, %s45_s7 }
  0x1e   :  { %p1330_p10 = scmp.ne.s32.totalorder %s45_s7, %s1329_s8  ;;  %p1335_p12 = scmp.lt.s32.totalorder %s1329_s8, %s1329_s8 }
  0x20   :  { %p1336_p13 = por %p1335_p12, %p1334_p11 }
  0x22   :  { %p1337_p0 = pnand %p1336_p13, %p1330_p10 }
  0x24   :  { %1340 = shalt.err (!%p1337_p0)
}
  0x25   :  { %s1419_s9 = smov [#allocation9]   ;;  %s1420_s10 = smov [#allocation10]  }
  0x26   :  { %47 = dma.vmem_to_smem %s45_s7, 16, %s1419_s9, [#allocation8]  }
  0x27   :  { %s55_s11 = sshll.u32 %s1420_s10, 4  ;;  %s1341_s14 = scalar_lea.hbm %s2437_s4, 768  ;;  %s56_s11 = int_to_ptr.vmem [resolvable:$true] %s55_s11 }
  0x28   :  { %p1342_p1 = scmp.ne.s32.totalorder %s2437_s4, %s1341_s14  ;;  %p1345_p2 = scmp.lt.u32.totalorder %s1341_s14, %s2437_s4 }
  0x2a   :  { %p1347_p3 = pnand %p1345_p2, %p1342_p1 }
  0x2c   :  { %1350 = shalt.err (!%p1347_p3)
}
  0x2d   :  { %s1351_s18 = scalar_lea.vmem %s56_s11, 768  ;;  %p1356_p5 = scmp.lt.s32.totalorder %s56_s11, %s56_s11 }
  0x2e   :  { %p1352_p4 = scmp.ne.s32.totalorder %s56_s11, %s1351_s18  ;;  %p1357_p6 = scmp.lt.s32.totalorder %s1351_s18, %s1351_s18 }
  0x30   :  { %p1358_p7 = por %p1357_p6, %p1356_p5 }
  0x32   :  { %p1359_p8 = pnand %p1358_p7, %p1352_p4 }
  0x34   :  { %1362 = shalt.err (!%p1359_p8)
}
  0x35   :  { %s2440_s19 = smov 128   ;;  %s2442_s20 = smov 8  }
  0x36   :  { %61 = dma.hbm_to_vmem [thread:$0]  %s2437_s4, 768, %s56_s11, [#allocation4], %s2440_s19, %s2440_s19, %s2442_s20  }
  0x37   :  { %1407 = dma.done.wait [#allocation6], 16  }
  0x38   :  { %1408 = vsyncadd [#allocation6], 4294967280 }
  0x39   :  { %1409 = dma.done.wait [#allocation8], 32  }
  0x3a   :  { %1410 = vsyncadd [#allocation8], 4294967264 }
  0x3b   :  { %1411 = dma.done.wait [#allocation4], 768  }
  0x3c   :  { %1412 = vsyncadd [#allocation4], 4294966528 }
  0x3d   :  { %74 = sfence }
  0x3e   :  { %v91_v0 = vld [vmem:[#allocation10] sm:$0xff]  ;;  %v92_v1 = vld [vmem:[#allocation10 + $0x8] sm:$0xff]  ;;  %v94_v2 = vld [vmem:[#allocation10 + $0x10] sm:$0xff]  ;;  %s2444_s4 = smov 127   ;;  %s2446_s23 = smov 1  }
  0x3f   :  { %v101_v3 = vsub.f32 1.6, %v91_v0  ;;  %v102_v4 = vsub.f32 1.6, %v92_v1  ;;  %v111_v5 = vsub.f32 1.6, %v94_v2 }
  0x40   :  { %v95_v6 = vld [vmem:[#allocation10 + $0x18] sm:$0xff]  ;;  %v97_v7 = vld [vmem:[#allocation10 + $0x20] sm:$0xff]  ;;  %v98_v8 = vld [vmem:[#allocation10 + $0x28] sm:$0xff]  ;;  %v99_v12 = vmul.f32 0.6, %v91_v0  ;;  %s1680_s24 = sld [smem:[#allocation3 + $0x2]] }
  0x41   :  { %1243 = vrcp.f32 %v101_v3  ;;  %v112_v9 = vsub.f32 1.6, %v95_v6  ;;  %v121_v10 = vsub.f32 1.6, %v97_v7  ;;  %v122_v11 = vsub.f32 1.6, %v98_v8 }
  0x42   :  { %1245 = vrcp.f32 %v102_v4  ;;  %v100_v13 = vmul.f32 0.6, %v92_v1  ;;  %v109_v19 = vmul.f32 0.6, %v94_v2  ;;  %v110_v20 = vmul.f32 0.6, %v95_v6 }
  0x43   :  { %1247 = vrcp.f32 %v111_v5  ;;  %v119_v23 = vmul.f32 0.6, %v97_v7  ;;  %v120_v26 = vmul.f32 0.6, %v98_v8  ;;  %s1682_s25 = sld [smem:[#allocation3 + $0x5]]  ;;  %s1686_s27 = sld [smem:[#allocation3 + $0x20]] }
  0x44   :  { %1249 = vrcp.f32 %v112_v9  ;;  %s1684_s26 = sld [smem:[#allocation3 + $0x1d]]  ;;  %s1688_s28 = sld [smem:[#allocation3 + $0x3]] }
  0x45   :  { %1251 = vrcp.f32 %v121_v10  ;;  %s1690_s29 = sld [smem:[#allocation3]]  ;;  %s1692_s1 = sld [smem:[#allocation3 + $0x1e]] }
  0x46   :  { %1253 = vrcp.f32 %v122_v11  ;;  %s1694_s0 = sld [smem:[#allocation7]]  ;;  %s1696_s30 = sld [smem:[#allocation3 + $0x1b]] }
  0x47   :  { %s1698_s7 = sld [smem:[#allocation7 + $0x1]]  ;;  %s1702_s9 = sld [smem:[#allocation3 + $0x4]] }
  0x48   :  { %s1700_s8 = sld [smem:[#allocation3 + $0x1]]  ;;  %s1704_s10 = sld [smem:[#allocation3 + $0x1c]] }
  0x49   :  { %2504 = sst [smem:[#allocation19_spill]] %s1682_s25  ;;  %s1706_s11 = sld [smem:[#allocation3 + $0x1f]]  ;;  %v2481_v49 = vstv %s1686_s27 }
  0x4a   :  { %2505 = sst [smem:[#allocation20_spill]] %s1686_s27  ;;  %s1708_s12 = sld [smem:[#allocation3 + $0x8]] }
  0x4b   :  { %v1244_v14 = vpop.eup %1243  ;;  %2506 = sst [smem:[#allocation21_spill]] %s1688_s28  ;;  %s1710_s13 = sld [smem:[#allocation3 + $0x23]]  ;;  %v2475_v52 = vstv %s1690_s29 }
  0x4c   :  { %v1246_v15 = vpop.eup %1245  ;;  %v1486_v16 = vmul.f32 %v1244_v14, %v99_v12  ;;  %2507 = sst [smem:[#allocation22_spill]] %s1692_s1  ;;  %s1712_s14 = sld [smem:[#allocation3 + $0x6]] }
  0x4d   :  { %v1248_v17 = vpop.eup %1247  ;;  %v1488_v18 = vmul.f32 %v1246_v15, %v100_v13  ;;  %s1714_s15 = sld [smem:[#allocation3 + $0x7]]  ;;  %s1716_s16 = sld [smem:[#allocation3 + $0x21]] }
  0x4e   :  { %v1250_v21 = vpop.eup %1249  ;;  %v1029_v22 = vand.u32 2147483647, %v1486_v16  ;;  %v1492_v28 = vmul.f32 %v1248_v17, %v109_v19  ;;  %vm1033_vm0 = vcmp.lt.f32.partialorder %v1486_v16, 0  ;;  %vm1034_vm1 = vcmp.eq.f32.partialorder %v1486_v16, 0  ;;  %s1718_s2 = sld [smem:[#allocation3 + $0x22]]  ;;  %s1720_s17 = sld [smem:[#allocation3 + $0x9]] }
  0x4f   :  { %v1252_v24 = vpop.eup %1251  ;;  %v1055_v25 = vand.u32 2147483647, %v1488_v18  ;;  %v1494_v29 = vmul.f32 %v1250_v21, %v110_v20  ;;  %vm1059_vm2 = vcmp.lt.f32.partialorder %v1488_v18, 0  ;;  %vm1035_vm3 = vcmp.eq.f32.partialorder %v1486_v16, 1065353216  ;;  %s1722_s18 = sld [smem:[#allocation3 + $0xc]]  ;;  %s1728_s22 = sld [smem:[#allocation3 + $0x27]] }
  0x50   :  { %v1254_v27 = vpop.eup %1253  ;;  %1255 = vlog2.f32 %v1029_v22  ;;  %v1496_v30 = vmul.f32 %v1252_v24, %v119_v23  ;;  %v1081_v31 = vand.u32 2147483647, %v1492_v28  ;;  %vm1512_vm4 = vcmp.eq.f32.partialorder %v1029_v22, 2139095040  ;;  %2508 = sst [smem:[#allocation23_spill]] %s1708_s12  ;;  %s1730_s19 = sld [smem:[#allocation3 + $0xa]] }
  0x51   :  { %1257 = vlog2.f32 %v1055_v25  ;;  %v1499_v32 = vmul.f32 %v1254_v27, %v120_v26  ;;  %v1107_v33 = vand.u32 2147483647, %v1494_v29  ;;  %vm1046_vm5 = vcmp.ne.f32.partialorder %v1486_v16, %v1486_v16  ;;  %2509 = sst [smem:[#allocation24_spill]] %s1710_s13  ;;  %s1724_s21 = sld [smem:[#allocation3 + $0x24]] }
  0x52   :  { %1259 = vlog2.f32 %v1081_v31  ;;  %v1133_v34 = vand.u32 2147483647, %v1496_v30  ;;  %vm1060_vm6 = vcmp.eq.f32.partialorder %v1488_v18, 0  ;;  %vm1061_vm7 = vcmp.eq.f32.partialorder %v1488_v18, 1065353216  ;;  %2510 = sst [smem:[#allocation25_spill]] %s1712_s14  ;;  %s1735_s20 = sld [smem:[#allocation3 + $0xf]] }
  0x53   :  { %1261 = vlog2.f32 %v1107_v33  ;;  %v1159_v35 = vand.u32 2147483647, %v1499_v32  ;;  %vm1520_vm8 = vcmp.eq.f32.partialorder %v1055_v25, 2139095040  ;;  %vm1072_vm9 = vcmp.ne.f32.partialorder %v1488_v18, %v1488_v18  ;;  %2511 = sst [smem:[#allocation26_spill]] %s1716_s16  ;;  %s1745_s5 = sld [smem:[#allocation3 + $0xb]] }
  0x54   :  { %1263 = vlog2.f32 %v1133_v34  ;;  %vm1085_vm10 = vcmp.lt.f32.partialorder %v1492_v28, 0  ;;  %vm1086_vm11 = vcmp.eq.f32.partialorder %v1492_v28, 0  ;;  %vm1087_vm12 = vcmp.eq.f32.partialorder %v1492_v28, 1065353216  ;;  %s1753_s6 = sld [smem:[#allocation3 + $0xd]]  ;;  %s1763_s3 = sld [smem:[#allocation3 + $0x26]] }
  0x55   :  { %1265 = vlog2.f32 %v1159_v35  ;;  %vm1098_vm13 = vcmp.ne.f32.partialorder %v1492_v28, %v1492_v28  ;;  %vm1111_vm14 = vcmp.lt.f32.partialorder %v1494_v29, 0  ;;  %vm1112_vm15 = vcmp.eq.f32.partialorder %v1494_v29, 0  ;;  %2512 = sst [smem:[#allocation27_spill]] %s1728_s22  ;;  %s1775_s1 = sld [smem:[#allocation3 + $0x11]] }
  0x56   :  { %v250_v62 = vstv %s1704_s10  ;;  %s1784_s10 = sld [smem:[#allocation3 + $0x10]]  ;;  %s1786_s12 = sld [smem:[#allocation3 + $0x2b]] }
  0x57   :  { %s1798_s13 = sld [smem:[#allocation3 + $0x2c]]  ;;  %s1813_s16 = sld [smem:[#allocation3 + $0x2e]] }
  0x58   :  { %2513 = sst [smem:[#allocation28_spill]] %s1735_s20  ;;  %s1835_s14 = sld [smem:[#allocation3 + $0x2d]] }
  0x59   :  { %s1841_s28 = sld [smem:[#allocation3 + $0x30]]  ;;  %s1859_s22 = sld [smem:[#allocation3 + $0x16]] }
  0x5a   :  { %v1256_v36 = vpop.eup %1255  ;;  %s1843_s27 = sld [smem:[#allocation3 + $0x18]]  ;;  %s1861_s20 = sld [smem:[#allocation3 + $0x31]] }
  0x5b   :  { %v1258_v37 = vpop.eup %1257  ;;  %v1031_v38 = vmul.f32 1.1111112, %v1256_v36 }
  0x5c   :  { %v1057_v39 = vmul.f32 1.1111112, %v1258_v37  ;;  %v1260_v40 = vpop.eup %1259 }
  0x5d   :  { %1267 = vpow2.f32 %v1031_v38  ;;  %v1262_v41 = vpop.eup %1261  ;;  %v1083_v42 = vmul.f32 1.1111112, %v1260_v40 }
  0x5e   :  { %1269 = vpow2.f32 %v1057_v39  ;;  %v1109_v43 = vmul.f32 1.1111112, %v1262_v41  ;;  %v1264_v44 = vpop.eup %1263 }
  0x5f   :  { %1271 = vpow2.f32 %v1083_v42  ;;  %v1266_v45 = vpop.eup %1265  ;;  %v1135_v46 = vmul.f32 1.1111112, %v1264_v44  ;;  %v75_v44 = vlaneseq }
  0x60   :  { %1273 = vpow2.f32 %v1109_v43  ;;  %v1161_v47 = vmul.f32 1.1111112, %v1266_v45 }
  0x61   :  { %1275 = vpow2.f32 %v1135_v46  ;;  %v76_v45 = vand.u32 127, %v75_v44  ;;  %v2477_v46 = vstv %s1680_s24 }
  0x62   :  { %1277 = vpow2.f32 %v1161_v47  ;;  %v2485_v47 = vstv %s1682_s25  ;;  %s1852_s25 = sld [smem:[#allocation3 + $0x14]] }
  0x67   :  { %v1268_v48 = vpop.eup %1267 }
  0x68   :  { %v1270_v50 = vpop.eup %1269  ;;  %v1039_v51 = vsel %vm1033_vm0, 2143289344, %v1268_v48  ;;  %vm1541_vm0 = vcmp.eq.f32.partialorder %v1081_v31, 2139095040  ;;  %v2480_v48 = vstv %s1684_s26 }
  0x69   :  { %v1040_v53 = vsel %vm1034_vm1, 0, %v1039_v51  ;;  %v1065_v54 = vsel %vm1059_vm2, 2143289344, %v1270_v50  ;;  %v1272_v59 = vpop.eup %1271  ;;  %vm1124_vm1 = vcmp.ne.f32.partialorder %v1494_v29, %v1494_v29  ;;  %vm1553_vm2 = vcmp.eq.f32.partialorder %v1107_v33, 2139095040 }
  0x6a   :  { %v1045_v55 = vsel %vm1512_vm4, 2139095040, %v1040_v53  ;;  %v1066_v56 = vsel %vm1060_vm6, 0, %v1065_v54  ;;  %v1274_v63 = vpop.eup %1273  ;;  %v1091_v0 = vsel %vm1085_vm10, 2143289344, %v1272_v59  ;;  %vm1138_vm4 = vcmp.eq.f32.partialorder %v1496_v30, 0 }
  0x6b   :  { %v1049_v57 = vsel %vm1046_vm5, 2143289344, %v1045_v55  ;;  %v1071_v58 = vsel %vm1520_vm8, 2139095040, %v1066_v56  ;;  %v1092_v3 = vsel %vm1086_vm11, 0, %v1091_v0  ;;  %v1117_v4 = vsel %vm1111_vm14, 2143289344, %v1274_v63  ;;  %v1276_v5 = vpop.eup %1275 }
  0x6c   :  { %v1539_v60 = vsel %vm1035_vm3, 1065353216, %v1049_v57  ;;  %v1075_v61 = vsel %vm1072_vm9, 2143289344, %v1071_v58  ;;  %vm1137_vm3 = vcmp.lt.f32.partialorder %v1496_v30, 0  ;;  %vm1163_vm5 = vcmp.lt.f32.partialorder %v1499_v32, 0  ;;  %v1278_v8 = vpop.eup %1277 }
  0x6d   :  { %139 = vrot.lane.b32.xlu1 %v1539_v60, %s2444_s4  ;;  %133 = vrot.lane.b32.xlu0 %v1539_v60, %s2446_s23  ;;  %v1561_v2 = vsel %vm1061_vm7, 1065353216, %v1075_v61  ;;  %v1097_v6 = vsel %vm1541_vm0, 2139095040, %v1092_v3  ;;  %vm1113_vm6 = vcmp.eq.f32.partialorder %v1494_v29, 1065353216  ;;  %v1118_v7 = vsel %vm1112_vm15, 0, %v1117_v4 }
  0x6e   :  { %vm1164_vm7 = vcmp.eq.f32.partialorder %v1499_v32, 0  ;;  %v1101_v9 = vsel %vm1098_vm13, 2143289344, %v1097_v6  ;;  %v1123_v10 = vsel %vm1553_vm2, 2139095040, %v1118_v7  ;;  %vm1581_vm8 = vcmp.eq.f32.partialorder %v1133_v34, 2139095040 }
  0x6f   :  { %v1143_v12 = vsel %vm1137_vm3, 2143289344, %v1276_v5  ;;  %v1127_v13 = vsel %vm1124_vm1, 2143289344, %v1123_v10  ;;  %vm1596_vm9 = vcmp.eq.f32.partialorder %v1159_v35, 2139095040  ;;  %v1169_v16 = vsel %vm1163_vm5, 2143289344, %v1278_v8 }
  0x70   :  { %v1144_v14 = vsel %vm1138_vm4, 0, %v1143_v12  ;;  %v1604_v17 = vsel %vm1087_vm12, 1065353216, %v1101_v9  ;;  %v1606_v18 = vsel %vm1113_vm6, 1065353216, %v1127_v13  ;;  %v1170_v19 = vsel %vm1164_vm7, 0, %v1169_v16 }
  0x71   :  { %141 = vrot.lane.b32.xlu1 %v1561_v2, %s2444_s4  ;;  %135 = vrot.lane.b32.xlu0 %v1561_v2, %s2446_s23  ;;  %v177_v20 = vrot.slane %v1539_v60, 1  ;;  %v157_v21 = vrot.slane %v1561_v2, 7  ;;  %vm1150_vm10 = vcmp.ne.f32.partialorder %v1496_v30, %v1496_v30  ;;  %v1149_v22 = vsel %vm1581_vm8, 2139095040, %v1144_v14 }
  0x72   :  { %v1175_v23 = vsel %vm1596_vm9, 2139095040, %v1170_v19  ;;  %vm1176_vm11 = vcmp.ne.f32.partialorder %v1499_v32, %v1499_v32  ;;  %v178_v24 = vrot.slane %v1561_v2, 1  ;;  %v156_v25 = vrot.slane %v1539_v60, 7 }
  0x73   :  { %vm1139_vm12 = vcmp.eq.f32.partialorder %v1496_v30, 1065353216  ;;  %vm1165_vm13 = vcmp.eq.f32.partialorder %v1499_v32, 1065353216  ;;  %vm147_vm14 = vcmask 1040384   ;;  %vm170_vm15 = vcmask 1046528  }
  0x74   :  { %v1153_v26 = vsel %vm1150_vm10, 2143289344, %v1149_v22  ;;  %v1179_v27 = vsel %vm1176_vm11, 2143289344, %v1175_v23  ;;  %v1629_v28 = vsel %vm147_vm14, %v156_v25, %v157_v21  ;;  %v1634_v29 = vsel %vm170_vm15, %v177_v20, %v178_v24 }
  0x75   :  { %297 = vrot.lane.b32.xlu0 %v1604_v17, %s2446_s23  ;;  %299 = vrot.lane.b32.xlu1 %v1606_v18, %s2446_s23  ;;  %v1640_v30 = vsel %vm1139_vm12, 1065353216, %v1153_v26  ;;  %v1642_v31 = vsel %vm1165_vm13, 1065353216, %v1179_v27  ;;  %v320_v32 = vrot.slane %v1606_v18, 7  ;;  %v339_v33 = vrot.slane %v1604_v17, 1 }
  0x76   :  { %v340_v34 = vrot.slane %v1606_v18, 1  ;;  %v319_v35 = vrot.slane %v1604_v17, 7  ;;  %v482_v38 = vrot.slane %v1642_v31, 7  ;;  %v501_v39 = vrot.slane %v1640_v30, 1 }
  0x77   :  { %v2474_v40 = vrot.slane %v1642_v31, 1  ;;  %v481_v41 = vrot.slane %v1640_v30, 7  ;;  %v81_v50 = vand.u32 15, %v76_v45  ;;  %v214_v53 = vstv %s1702_s9  ;;  %s1755_s9 = sld [smem:[#allocation3 + $0xe]] }
  0x78   :  { %v1659_v36 = vsel %vm147_vm14, %v319_v35, %v320_v32  ;;  %v1664_v37 = vsel %vm170_vm15, %v339_v33, %v340_v34  ;;  %v2476_v54 = vstv %s1696_s30  ;;  %v2479_v56 = vstv %s1694_s0 }
  0x79   :  { %303 = vrot.lane.b32.xlu0 %v1604_v17, %s2444_s4  ;;  %305 = vrot.lane.b32.xlu1 %v1606_v18, %s2444_s4  ;;  %v1673_v42 = vsel %vm147_vm14, %v481_v41, %v482_v38  ;;  %v1678_v43 = vsel %vm170_vm15, %v501_v39, %v2474_v40  ;;  %v196_v57 = vstv %s1700_s8  ;;  %v268_v58 = vstv %s1706_s11  ;;  %s1765_s8 = sld [smem:[#allocation3 + $0x28]]  ;;  %s1773_s11 = sld [smem:[#allocation3 + $0x29]] }
  0x7a   :  { %v161_v59 = vsel %vm147_vm14, 0.0, %v156_v25  ;;  %v2478_v61 = vstv %s1698_s7  ;;  %v182_v0 = vsel %vm170_vm15, %v178_v24, 0.0  ;;  %v1768_v1 = vmul.f32 %v1539_v60, %v214_v53 }
  0x7b   :  { %v1777_v6 = vmul.f32 %v196_v57, %v161_v59  ;;  %v1780_v7 = vmul.f32 %v1539_v60, %v268_v58  ;;  %v232_v8 = vstv %s1714_s15  ;;  %v286_v9 = vstv %s1718_s2  ;;  %s1800_s15 = sld [smem:[#allocation3 + $0x12]]  ;;  %s1811_s2 = sld [smem:[#allocation3 + $0x13]] }
  0x7c   :  { %v1788_v10 = vmul.f32 %v250_v62, %v161_v59  ;;  %v1791_v11 = vmul.f32 %v1561_v2, %v214_v53  ;;  %v1793_v12 = vmul.f32 %v232_v8, %v182_v0  ;;  %v1796_v13 = vmul.f32 %v1561_v2, %v268_v58 }
  0x7d   :  { %459 = vrot.lane.b32.xlu0 %v1640_v30, %s2446_s23  ;;  %461 = vrot.lane.b32.xlu1 %v1642_v31, %s2446_s23  ;;  %s1743_s23 = sld [smem:[#allocation3 + $0x2a]]  ;;  %v1802_v60 = vmul.f32 %v286_v9, %v182_v0  ;;  %v1805_v14 = vmul.f32 %v196_v57, %v1629_v28  ;;  %v324_v15 = vsel %vm147_vm14, 0.0, %v319_v35  ;;  %v358_v16 = vstv %s1730_s19  ;;  %s1833_s19 = sld [smem:[#allocation3 + $0x15]] }
  0x7e   :  { %vm1815_vm0 = vcmp.ne.s32.totalorder %v81_v50, 15  ;;  %vm1819_vm1 = vcmp.ne.s32.totalorder %v81_v50, 0  ;;  %v1824_v20 = vmul.f32 %v250_v62, %v1629_v28  ;;  %v1827_v21 = vmul.f32 %v232_v8, %v1634_v29 }
  0x7f   :  { %2515 = sst [smem:[#allocation30_spill]] %s1773_s11  ;;  %v1830_v22 = vmul.f32 %v286_v9, %v1634_v29  ;;  %v1847_v32 = vmul.f32 %v358_v16, %v324_v15  ;;  %v376_v33 = vstv %s1753_s6  ;;  %v430_v44 = vstv %s1765_s8  ;;  %s1871_s6 = sld [smem:[#allocation3 + $0x17]] }
  0x80   :  { %v1864_v45 = vmul.f32 %v358_v16, %v1659_v36  ;;  %v1876_v58 = vmul.f32 %v1604_v17, %v376_v33  ;;  %v394_v59 = vstv %s1784_s10  ;;  %v448_v62 = vstv %s1786_s12  ;;  %s1883_s8 = sld [smem:[#allocation3 + $0x32]]  ;;  %s1902_s12 = sld [smem:[#allocation3 + $0x19]] }
  0x81   :  { %465 = vrot.lane.b32.xlu0 %v1640_v30, %s2444_s4  ;;  %467 = vrot.lane.b32.xlu1 %v1642_v31, %s2444_s4  ;;  %s1737_s4 = sld [smem:[#allocation3 + $0x25]]  ;;  %v344_v0 = vsel %vm170_vm15, %v340_v34, 0.0  ;;  %v1889_v8 = vmul.f32 %v1606_v18, %v376_v33  ;;  %s1893_s10 = sld [smem:[#allocation3 + $0x1a]]  ;;  %v1896_v16 = vmul.f32 %v1606_v18, %v430_v44  ;;  %v486_v34 = vsel %vm147_vm14, 0.0, %v481_v41 }
  0x82   :  { %s1905_s11 = sld [smem:[#allocation3 + $0x34]]  ;;  %v1908_v33 = vmul.f32 %v394_v59, %v1664_v37  ;;  %v1911_v40 = vmul.f32 %v448_v62, %v1664_v37  ;;  %v1913_v18 = vmul.f32 %v394_v59, %v344_v0 }
  0x83   :  { %2514 = sst [smem:[#allocation29_spill]] %s1743_s23  ;;  %s1873_s23 = sld [smem:[#allocation3 + $0x2f]] }
  0x86   :  { %2521 = sst [smem:[#allocation32_spill]] %s1902_s12  ;;  %v2484_v27 = vstv %s1902_s12  ;;  %s2537_s12 = sld [smem:[#allocation26_spill]] }
  0x87   :  { %v412_v23 = vstv %s1737_s4  ;;  %s1850_s4 = sld [smem:[#allocation3 + $0x33]]  ;;  %2520 = sst [smem:[#allocation31_spill]] %s1893_s10 }
  0x88   :  { %v1856_v39 = vmul.f32 %v412_v23, %v324_v15  ;;  %v1867_v50 = vmul.f32 %v412_v23, %v1659_v36  ;;  %v1886_v36 = vmul.f32 %v1604_v17, %v430_v44  ;;  %v520_v17 = vstv %s1811_s2  ;;  %2522 = sst [smem:[#allocation33_spill]] %s1905_s11  ;;  %s2529_s2 = sld [smem:[#allocation22_spill]] }
  0x89   :  { %v574_v23 = vstv %s1813_s16  ;;  %v1915_v44 = vmul.f32 %v448_v62, %v344_v0  ;;  %v1923_v35 = vmul.f32 %v520_v17, %v486_v34  ;;  %v538_v0 = vstv %s1859_s22  ;;  %s2525_s16 = sld [smem:[#allocation20_spill]]  ;;  %s2528_s22 = sld [smem:[#allocation21_spill]] }
  0x8a   :  { %v1925_v37 = vmul.f32 %v574_v23, %v486_v34  ;;  %v592_v15 = vstv %s1861_s20  ;;  %v1937_v34 = vmul.f32 %v520_v17, %v1673_v42  ;;  %v1945_v29 = vmul.f32 %v1640_v30, %v538_v0  ;;  %s2524_s20 = sld [smem:[#allocation19_spill]]  ;;  %s2534_s10 = sld [smem:[#allocation23_spill]] }
  0x8b   :  { %v1948_v41 = vmul.f32 %v1640_v30, %v592_v15  ;;  %v2486_v26 = vstv %s1905_s11  ;;  %v1961_v30 = vmul.f32 %v1642_v31, %v538_v0  ;;  %v1964_v53 = vmul.f32 %v1642_v31, %v592_v15  ;;  %s2536_s11 = sld [smem:[#allocation25_spill]] }
  0x8d   :  { %2523 = vst [vmem:[#allocation34_spill] sm:$0xff] %v1948_v41  ;;  %2526 = vst [vmem:[#allocation35_spill] sm:$0xff] %v1961_v30  ;;  %v2548_v41 = vstv %s1698_s7  ;;  %s2281_s7 = sld [smem:[#allocation9 + $0x2]] }
  0x8e   :  { %2527 = vst [vmem:[#allocation36_spill] sm:$0xff] %v1964_v53 }
  0xdf   :  { %v140_v57 = vpop.permute.xlu1 %139  ;;  %v134_v38 = vpop.permute.xlu0 %133 }
  0xe0   :  { %v143_v59 = vsel %vm1815_vm0, %v140_v57, 0.0  ;;  %v137_v62 = vsel %vm1819_vm1, %v134_v38, 0.0  ;;  %v1940_v57 = vmul.f32 %v574_v23, %v1673_v42 }
  0xe1   :  { %v164_v9 = vrot.slane %v143_v59, 7  ;;  %v148_v28 = vrot.slane %v137_v62, 7  ;;  %v183_v5 = vrot.slane %v143_v59, 1  ;;  %v275_v15 = vmul.f32 %v2481_v49, %v143_v59 }
  0xe3   :  { %v169_v38 = vsel %vm147_vm14, 0.0, %v164_v9  ;;  %v142_v25 = vpop.permute.xlu1 %141  ;;  %v153_v17 = vsel %vm147_vm14, 0.0, %v148_v28  ;;  %v136_v23 = vpop.permute.xlu0 %135 }
  0xe4   :  { %v144_v42 = vsel %vm1815_vm0, %v142_v25, 0.0  ;;  %v191_v24 = vmul.f32 %v2475_v52, %v153_v17  ;;  %v245_v3 = vmul.f32 %v2476_v54, %v153_v17  ;;  %v203_v25 = vmul.f32 %v2477_v46, %v169_v38 }
  0xe5   :  { %v257_v4 = vmul.f32 %v2480_v48, %v169_v38  ;;  %v165_v63 = vrot.slane %v144_v42, 7  ;;  %v184_v51 = vrot.slane %v144_v42, 1  ;;  %v138_v0 = vsel %vm1819_vm1, %v136_v23, 0.0 }
  0xe6   :  { %v193_v55 = vadd.f32 %v191_v24, %v2479_v56  ;;  %v247_v52 = vadd.f32 %v245_v3, %v2478_v61  ;;  %v221_v17 = vmul.f32 %v2485_v47, %v143_v59  ;;  %v1983_v46 = vmul.f32 %v2484_v27, %v1678_v43 }
  0xe7   :  { %v298_v54 = vpop.permute.xlu0 %297  ;;  %v1988_v38 = vmul.f32 %v2486_v26, %v1678_v43  ;;  %v171_v24 = vrot.slane %v137_v62, 1  ;;  %v2532_v61 = vstv %s2528_s22  ;;  %v2533_v48 = vstv %s2529_s2 }
  0xe8   :  { %2530 = vst [vmem:[#allocation37_spill] sm:$0xff] %v1983_v46  ;;  %v199_v3 = vadd.f32 %v1777_v6, %v193_v55  ;;  %v209_v56 = vmul.f32 %v2532_v61, %v137_v62  ;;  %v253_v23 = vadd.f32 %v1788_v10, %v247_v52  ;;  %v263_v59 = vmul.f32 %v2533_v48, %v137_v62 }
  0xe9   :  { %2531 = vst [vmem:[#allocation38_spill] sm:$0xff] %v1988_v38  ;;  %v166_v49 = vsel %vm147_vm14, %v164_v9, %v165_v63  ;;  %v149_v27 = vrot.slane %v138_v0, 7  ;;  %v172_v47 = vrot.slane %v138_v0, 1  ;;  %v185_v38 = vsel %vm170_vm15, %v183_v5, %v184_v51 }
  0xea   :  { %v205_v43 = vadd.f32 %v203_v25, %v199_v3  ;;  %v259_v26 = vadd.f32 %v257_v4, %v253_v23  ;;  %v2000_v55 = vsel %vm1819_vm1, %v298_v54, 0.0  ;;  %v188_v48 = vsel %vm170_vm15, %v184_v51, 0.0 }
  0xeb   :  { %v2535_v52 = vstv %s2524_s20  ;;  %v150_v63 = vsel %vm147_vm14, %v148_v28, %v149_v27  ;;  %v173_v6 = vsel %vm170_vm15, %v171_v24, %v172_v47  ;;  %v2538_v10 = vstv %s1690_s29  ;;  %s2542_s20 = sld [smem:[#allocation24_spill]]  ;;  %s2567_s29 = sld [smem:[#allocation30_spill]] }
  0xec   :  { %v222_v61 = vmul.f32 %v2535_v52, %v144_v42  ;;  %v211_v4 = vadd.f32 %v209_v56, %v205_v43  ;;  %v265_v5 = vadd.f32 %v263_v59, %v259_v26  ;;  %v192_v9 = vmul.f32 %v2538_v10, %v150_v63  ;;  %v300_v10 = vpop.permute.xlu1 %299 }
  0xed   :  { %v311_v54 = vrot.slane %v2000_v55, 7  ;;  %v2539_v62 = vstv %s1680_s24  ;;  %v2540_v3 = vstv %s2534_s10  ;;  %v2541_v23 = vstv %s2525_s16  ;;  %s2555_s24 = sld [smem:[#allocation27_spill]]  ;;  %s2341_s10 = sld [smem:[#allocation9 + $0xc]] }
  0xee   :  { %v204_v25 = vmul.f32 %v2539_v62, %v166_v49  ;;  %v239_v51 = vmul.f32 %v2540_v3, %v185_v38  ;;  %v276_v52 = vmul.f32 %v2541_v23, %v144_v42  ;;  %v2543_v46 = vstv %s1696_s30  ;;  %s2279_s30 = sld [smem:[#allocation9 + $0x1]]  ;;  %s2364_s16 = sld [smem:[#allocation9 + $0xe]] }
  0xef   :  { %v246_v27 = vmul.f32 %v2543_v46, %v150_v63  ;;  %v217_v28 = vadd.f32 %v1768_v1, %v211_v4  ;;  %v271_v56 = vadd.f32 %v1780_v7, %v265_v5  ;;  %v2544_v24 = vstv %s1684_s26  ;;  %s2565_s26 = sld [smem:[#allocation28_spill]] }
  0xf0   :  { %v258_v26 = vmul.f32 %v2544_v24, %v166_v49  ;;  %v2545_v59 = vstv %s1694_s0  ;;  %v2546_v53 = vmov %v2540_v3  ;;  %v2547_v62 = vstv %s2536_s11  ;;  %s2568_s0 = sld [smem:[#allocation29_spill]] }
  0xf1   :  { %v194_v43 = vadd.f32 %v192_v9, %v2545_v59  ;;  %v2026_v30 = vmul.f32 %v2546_v53, %v188_v48  ;;  %v227_v3 = vmul.f32 %v2547_v62, %v173_v6  ;;  %v248_v42 = vadd.f32 %v246_v27, %v2548_v41 }
  0xf2   :  { %v2549_v23 = vstv %s2537_s12  ;;  %v223_v1 = vadd.f32 %v221_v17, %v217_v28  ;;  %v277_v63 = vadd.f32 %v275_v15, %v271_v56  ;;  %v316_v49 = vsel %vm147_vm14, 0.0, %v311_v54 }
  0xf3   :  { %v281_v46 = vmul.f32 %v2549_v23, %v173_v6  ;;  %v200_v7 = vadd.f32 %v1805_v14, %v194_v43  ;;  %v2550_v4 = vstv %s2542_s20  ;;  %v2551_v9 = vstv %s2528_s22  ;;  %v304_v23 = vpop.permute.xlu0 %303  ;;  %s2367_s22 = sld [smem:[#allocation9 + $0xf]]  ;;  %s2380_s20 = sld [smem:[#allocation9 + $0x11]] }
  0xf4   :  { %v293_v5 = vmul.f32 %v2550_v4, %v185_v38  ;;  %v210_v53 = vmul.f32 %v2551_v9, %v138_v0  ;;  %v254_v24 = vadd.f32 %v1824_v20, %v248_v42  ;;  %v302_v41 = vsel %vm1819_vm1, %v300_v10, 0.0 }
  0xf5   :  { %v176_v6 = vsel %vm170_vm15, %v172_v47, 0.0  ;;  %v206_v17 = vadd.f32 %v204_v25, %v200_v7  ;;  %v229_v15 = vadd.f32 %v227_v3, %v223_v1  ;;  %v283_v27 = vadd.f32 %v281_v46, %v277_v63 }
  0xf6   :  { %v260_v14 = vadd.f32 %v258_v26, %v254_v24  ;;  %v2552_v28 = vstv %s2529_s2  ;;  %v2553_v59 = vstv %s1720_s17  ;;  %v2554_v43 = vstv %s1724_s21  ;;  %s2375_s2 = sld [smem:[#allocation9 + $0x10]] }
  0xf7   :  { %v264_v56 = vmul.f32 %v2552_v28, %v138_v0  ;;  %v353_v38 = vmul.f32 %v2553_v59, %v316_v49  ;;  %v407_v62 = vmul.f32 %v2554_v43, %v316_v49  ;;  %v212_v20 = vadd.f32 %v210_v53, %v206_v17 }
  0xf8   :  { %v235_v42 = vadd.f32 %v1827_v21, %v229_v15  ;;  %v289_v10 = vadd.f32 %v1830_v22, %v283_v27  ;;  %v312_v47 = vrot.slane %v302_v41, 7  ;;  %v294_v25 = vmul.f32 %v2550_v4, %v188_v48 }
  0xf9   :  { %v2556_v3 = vstv %s2536_s11  ;;  %v266_v26 = vadd.f32 %v264_v56, %v260_v14  ;;  %v2557_v1 = vstv %s2537_s12  ;;  %v218_v63 = vadd.f32 %v1791_v11, %v212_v20  ;;  %s2305_s11 = sld [smem:[#allocation9 + $0x6]]  ;;  %s2349_s12 = sld [smem:[#allocation9 + $0xd]] }
  0xfa   :  { %v228_v46 = vmul.f32 %v2556_v3, %v176_v6  ;;  %v282_v0 = vmul.f32 %v2557_v1, %v176_v6  ;;  %v241_v7 = vadd.f32 %v239_v51, %v235_v42  ;;  %v295_v49 = vadd.f32 %v293_v5, %v289_v10  ;;  %v306_v5 = vpop.permute.xlu1 %305 }
  0xfb   :  { %v307_v9 = vsel %vm1815_vm0, %v304_v23, 0.0  ;;  %v272_v21 = vadd.f32 %v1796_v13, %v266_v26  ;;  %v333_v22 = vrot.slane %v2000_v55, 1  ;;  %v2558_v48 = vstv %s1722_s18 }
  0xfc   :  { %v371_v53 = vmul.f32 %v2558_v48, %v2000_v55  ;;  %v2559_v24 = vstv %s2555_s24  ;;  %v224_v17 = vadd.f32 %v222_v61, %v218_v63  ;;  %v355_v15 = vadd.f32 %v353_v38, %v241_v7  ;;  %s1425_s24 = smov [#allocation12]  }
  0xfd   :  { %v425_v6 = vmul.f32 %v2559_v24, %v2000_v55  ;;  %v409_v11 = vadd.f32 %v407_v62, %v295_v49  ;;  %v313_v51 = vsel %vm147_vm14, %v311_v54, %v312_v47  ;;  %v278_v27 = vadd.f32 %v276_v52, %v272_v21 }
  0xfe   :  { %v334_v14 = vrot.slane %v302_v41, 1  ;;  %v2560_v13 = vmov %v2558_v48  ;;  %v327_v56 = vrot.slane %v307_v9, 7  ;;  %v230_v59 = vadd.f32 %v228_v46, %v224_v17 }
  0xff   :  { %v372_v28 = vmul.f32 %v2560_v13, %v302_v41  ;;  %v2561_v43 = vmov %v2559_v24  ;;  %v361_v20 = vadd.f32 %v1847_v32, %v355_v15  ;;  %v415_v55 = vadd.f32 %v1856_v39, %v409_v11 }
 0x100   :  { %v426_v23 = vmul.f32 %v2561_v43, %v302_v41  ;;  %v284_v61 = vadd.f32 %v282_v0, %v278_v27  ;;  %v2562_v38 = vstv %s1720_s17  ;;  %v332_v54 = vsel %vm147_vm14, 0.0, %v327_v56  ;;  %v460_v41 = vpop.permute.xlu0 %459  ;;  %s2290_s17 = sld [smem:[#allocation9 + $0x5]] }
 0x101   :  { %v354_v62 = vmul.f32 %v2562_v38, %v313_v51  ;;  %v308_v52 = vsel %vm1815_vm0, %v306_v5, 0.0  ;;  %v236_v42 = vadd.f32 %v1793_v12, %v230_v59  ;;  %v2563_v10 = vstv %s1745_s5  ;;  %s2595_s5 = sld [smem:[#allocation32_spill]] }
 0x102   :  { %v365_v47 = vmul.f32 %v2563_v10, %v332_v54  ;;  %v2564_v4 = vstv %s1763_s3  ;;  %v328_v46 = vrot.slane %v308_v52, 7  ;;  %v290_v32 = vadd.f32 %v1802_v60, %v284_v61  ;;  %s2180_s3 = sld [smem:[#allocation3 + $0x35]] }
 0x103   :  { %v419_v3 = vmul.f32 %v2564_v4, %v332_v54  ;;  %v335_v39 = vsel %vm170_vm15, %v333_v22, %v334_v14  ;;  %v338_v26 = vsel %vm170_vm15, %v334_v14, 0.0  ;;  %v2566_v1 = vstv %s1724_s21 }
 0x104   :  { %v408_v0 = vmul.f32 %v2566_v1, %v313_v51  ;;  %v242_v12 = vadd.f32 %v2026_v30, %v236_v42  ;;  %v367_v63 = vadd.f32 %v365_v47, %v361_v20  ;;  %v329_v49 = vsel %vm147_vm14, %v327_v56, %v328_v46 }
 0x105   :  { %v421_v7 = vadd.f32 %v419_v3, %v415_v55  ;;  %v296_v21 = vadd.f32 %v294_v25, %v290_v32  ;;  %v345_v48 = vrot.slane %v307_v9, 1  ;;  %v346_v60 = vrot.slane %v308_v52, 1 }
 0x106   :  { %v2095_v22 = vsel %vm1819_vm1, %v460_v41, 0.0  ;;  %v356_v24 = vadd.f32 %v354_v62, %v242_v12  ;;  %v373_v17 = vadd.f32 %v371_v53, %v367_v63  ;;  %v2569_v11 = vmov %v2563_v10  ;;  %v462_v53 = vpop.permute.xlu1 %461 }
 0x107   :  { %v427_v15 = vadd.f32 %v425_v6, %v421_v7  ;;  %v366_v51 = vmul.f32 %v2569_v11, %v329_v49  ;;  %v2570_v5 = vstv %s2565_s26  ;;  %v410_v27 = vadd.f32 %v408_v0, %v296_v21  ;;  %s934_s26 = sshll.u32 %s1425_s24, 4  ;;  %s935_s26 = int_to_ptr.vmem [resolvable:$true] %s934_s26 }
 0x108   :  { %v389_v30 = vmul.f32 %v2570_v5, %v335_v39  ;;  %v2571_v14 = vstv %s1755_s9  ;;  %v2572_v56 = vmov %v2564_v4  ;;  %v379_v59 = vadd.f32 %v1876_v58, %v373_v17  ;;  %s2618_s9 = sld [smem:[#allocation39_spill]]  ;;  %p1368_p10 = scmp.lt.s32.totalorder %s935_s26, %s935_s26 }
 0x109   :  { %v383_v13 = vmul.f32 %v2571_v14, %v307_v9  ;;  %v420_v25 = vmul.f32 %v2572_v56, %v329_v49  ;;  %v433_v43 = vadd.f32 %v1886_v36, %v427_v15  ;;  %v2573_v20 = vstv %s2567_s29  ;;  %s1363_s29 = scalar_lea.vmem %s935_s26, 768 }
 0x10a   :  { %v437_v55 = vmul.f32 %v2573_v20, %v307_v9  ;;  %v362_v61 = vadd.f32 %v1864_v45, %v356_v24  ;;  %v2574_v6 = vstv %s2568_s0  ;;  %v347_v62 = vsel %vm170_vm15, %v345_v48, %v346_v60  ;;  %v466_v48 = vpop.permute.xlu0 %465  ;;  %p1364_p9 = scmp.ne.s32.totalorder %s935_s26, %s1363_s29  ;;  %p1369_p11 = scmp.lt.s32.totalorder %s1363_s29, %s1363_s29 }
 0x10b   :  { %v443_v38 = vmul.f32 %v2574_v6, %v335_v39  ;;  %v416_v54 = vadd.f32 %v1867_v50, %v410_v27  ;;  %v473_v42 = vrot.slane %v2095_v22, 7  ;;  %v385_v10 = vadd.f32 %v383_v13, %v379_v59 }
 0x10c   :  { %v439_v58 = vadd.f32 %v437_v55, %v433_v43  ;;  %v368_v47 = vadd.f32 %v366_v51, %v362_v61  ;;  %v2575_v36 = vmov %v2571_v14  ;;  %v350_v9 = vsel %vm170_vm15, %v346_v60, 0.0  ;;  %p1370_p12 = por %p1369_p11, %p1368_p10 }
 0x10d   :  { %v384_v4 = vmul.f32 %v2575_v36, %v308_v52  ;;  %v422_v45 = vadd.f32 %v420_v25, %v416_v54  ;;  %v478_v3 = vsel %vm147_vm14, 0.0, %v473_v42  ;;  %v2121_v46 = vsel %vm1819_vm1, %v462_v53, 0.0 }
 0x10e   :  { %v391_v50 = vadd.f32 %v389_v30, %v385_v10  ;;  %v445_v41 = vadd.f32 %v443_v38, %v439_v58  ;;  %v374_v32 = vadd.f32 %v372_v28, %v368_v47  ;;  %v2576_v39 = vstv %s1775_s1  ;;  %v468_v10 = vpop.permute.xlu1 %467  ;;  %s2277_s1 = sld [smem:[#allocation9]]  ;;  %p1371_p13 = pnand %p1370_p12, %p1364_p9 }
 0x10f   :  { %v401_v1 = vmul.f32 %v2576_v39, %v347_v62  ;;  %v428_v0 = vadd.f32 %v426_v23, %v422_v45  ;;  %v2577_v12 = vstv %s1798_s13  ;;  %v2578_v7 = vstv %s1800_s15  ;;  %s2283_s13 = sld [smem:[#allocation9 + $0x3]]  ;;  %s2311_s15 = sld [smem:[#allocation9 + $0x7]] }
 0x110   :  { %v455_v63 = vmul.f32 %v2577_v12, %v347_v62  ;;  %v515_v49 = vmul.f32 %v2578_v7, %v478_v3  ;;  %v474_v21 = vrot.slane %v2121_v46, 7  ;;  %v397_v60 = vadd.f32 %v1908_v33, %v391_v50 }
 0x111   :  { %v451_v24 = vadd.f32 %v1911_v40, %v445_v41  ;;  %v380_v17 = vadd.f32 %v1889_v8, %v374_v32  ;;  %v2579_v28 = vstv %s1835_s14  ;;  %v2580_v11 = vmov %v2570_v5  ;;  %s2288_s14 = sld [smem:[#allocation9 + $0x4]] }
 0x112   :  { %v569_v15 = vmul.f32 %v2579_v28, %v478_v3  ;;  %v390_v23 = vmul.f32 %v2580_v11, %v338_v26  ;;  %v434_v51 = vadd.f32 %v1896_v16, %v428_v0  ;;  %v2581_v5 = vmov %v2573_v20 }
 0x113   :  { %v438_v30 = vmul.f32 %v2581_v5, %v308_v52  ;;  %v2582_v27 = vrot.slane %v1642_v31, 1  ;;  %v386_v33 = vadd.f32 %v384_v4, %v380_v17  ;;  %v403_v13 = vadd.f32 %v401_v1, %v397_v60 }
 0x114   :  { %v457_v40 = vadd.f32 %v455_v63, %v451_v24  ;;  %v469_v8 = vsel %vm1815_vm0, %v466_v48, 0.0  ;;  %v2583_v56 = vmov %v2574_v6  ;;  %v2584_v59 = vmov %v2576_v39 }
 0x115   :  { %v2143_v14 = vsel %vm170_vm15, %v2582_v27, 0.0  ;;  %v444_v25 = vmul.f32 %v2583_v56, %v338_v26  ;;  %v402_v43 = vmul.f32 %v2584_v59, %v350_v9  ;;  %v440_v16 = vadd.f32 %v438_v30, %v434_v51 }
 0x116   :  { %v475_v52 = vsel %vm147_vm14, %v473_v42, %v474_v21  ;;  %v392_v31 = vadd.f32 %v390_v23, %v386_v33  ;;  %v2585_v20 = vmov %v2577_v12  ;;  %v517_v61 = vadd.f32 %v515_v49, %v403_v13 }
 0x117   :  { %v456_v55 = vmul.f32 %v2585_v20, %v350_v9  ;;  %v571_v53 = vadd.f32 %v569_v15, %v457_v40  ;;  %v446_v6 = vadd.f32 %v444_v25, %v440_v16  ;;  %v495_v38 = vrot.slane %v2095_v22, 1 }
 0x118   :  { %v2586_v62 = vstv %s1833_s19  ;;  %v489_v26 = vrot.slane %v469_v8, 7  ;;  %v398_v58 = vadd.f32 %v1913_v18, %v392_v31  ;;  %v496_v42 = vrot.slane %v2121_v46, 1  ;;  %s2315_s19 = sld [smem:[#allocation9 + $0x8]] }
 0x119   :  { %v533_v54 = vmul.f32 %v2586_v62, %v2095_v22  ;;  %v2587_v47 = vmov %v2578_v7  ;;  %v523_v4 = vadd.f32 %v1923_v35, %v517_v61  ;;  %v452_v9 = vadd.f32 %v1915_v44, %v446_v6 }
 0x11a   :  { %v516_v36 = vmul.f32 %v2587_v47, %v475_v52  ;;  %v2588_v45 = vmov %v2579_v28  ;;  %v494_v50 = vsel %vm147_vm14, 0.0, %v489_v26  ;;  %v577_v41 = vadd.f32 %v1925_v37, %v571_v53 }
 0x11b   :  { %v570_v3 = vmul.f32 %v2588_v45, %v475_v52  ;;  %v404_v32 = vadd.f32 %v402_v43, %v398_v58  ;;  %v2589_v39 = vstv %s1852_s25  ;;  %v2590_v0 = vstv %s1873_s23  ;;  %v2597_v43 = vld [vmem:[#allocation34_spill] sm:$0xff]  ;;  %s2601_s25 = sld [smem:[#allocation31_spill]]  ;;  %s2604_s23 = sld [smem:[#allocation33_spill]] }
 0x11c   :  { %v527_v1 = vmul.f32 %v2589_v39, %v494_v50  ;;  %v581_v12 = vmul.f32 %v2590_v0, %v494_v50  ;;  %v470_v18 = vsel %vm1815_vm0, %v468_v10, 0.0  ;;  %v458_v63 = vadd.f32 %v456_v55, %v452_v9 }
 0x11d   :  { %v2591_v7 = vstv %s1841_s28  ;;  %v2592_v44 = vmov %v2586_v62  ;;  %v490_v37 = vrot.slane %v470_v18, 7  ;;  %v497_v21 = vsel %vm170_vm15, %v495_v38, %v496_v42  ;;  %s2617_s28 = smov 127  }
 0x11e   :  { %v587_v35 = vmul.f32 %v2591_v7, %v2095_v22  ;;  %v534_v49 = vmul.f32 %v2592_v44, %v2121_v46  ;;  %v518_v48 = vadd.f32 %v516_v36, %v404_v32  ;;  %v529_v60 = vadd.f32 %v527_v1, %v523_v4  ;;  %v2605_v4 = vld [vmem:[#allocation35_spill] sm:$0xff] }
 0x11f   :  { %v583_v24 = vadd.f32 %v581_v12, %v577_v41  ;;  %v572_v17 = vadd.f32 %v570_v3, %v458_v63  ;;  %v507_v28 = vrot.slane %v469_v8, 1  ;;  %v491_v22 = vsel %vm147_vm14, %v489_v26, %v490_v37  ;;  %v2611_v63 = vld [vmem:[#allocation37_spill] sm:$0xff] }
 0x120   :  { %v508_v15 = vrot.slane %v470_v18, 1  ;;  %v535_v11 = vadd.f32 %v533_v54, %v529_v60  ;;  %v524_v51 = vadd.f32 %v1937_v34, %v518_v48  ;;  %v2593_v5 = vmov %v2589_v39  ;;  %v2609_v39 = vld [vmem:[#allocation36_spill] sm:$0xff] }
 0x121   :  { %v589_v23 = vadd.f32 %v587_v35, %v583_v24  ;;  %v528_v30 = vmul.f32 %v2593_v5, %v491_v22  ;;  %v500_v27 = vsel %vm170_vm15, %v496_v42, 0.0  ;;  %v2594_v33 = vstv %s1871_s6  ;;  %v2612_v35 = vld [vmem:[#allocation38_spill] sm:$0xff]  ;;  %s2327_s6 = sld [smem:[#allocation9 + $0xa]] }
 0x122   :  { %v545_v13 = vmul.f32 %v2594_v33, %v469_v8  ;;  %v578_v40 = vadd.f32 %v1940_v57, %v572_v17  ;;  %v2596_v56 = vmov %v2590_v0  ;;  %v541_v59 = vadd.f32 %v1945_v29, %v535_v11 }
 0x123   :  { %v582_v25 = vmul.f32 %v2596_v56, %v491_v22  ;;  %v595_v16 = vadd.f32 %v2597_v43, %v589_v23  ;;  %v2598_v52 = vstv %s1883_s8  ;;  %v530_v34 = vadd.f32 %v528_v30, %v524_v51  ;;  %s2332_s8 = sld [smem:[#allocation9 + $0xb]] }
 0x124   :  { %v599_v31 = vmul.f32 %v2598_v52, %v469_v8  ;;  %v2599_v20 = vstv %s1843_s27  ;;  %v2600_v61 = vmov %v2591_v7  ;;  %v2602_v6 = vstv %s1850_s4  ;;  %s2616_s27 = smov 1   ;;  %s2318_s4 = sld [smem:[#allocation9 + $0x9]] }
 0x125   :  { %v551_v55 = vmul.f32 %v2599_v20, %v497_v21  ;;  %v588_v53 = vmul.f32 %v2600_v61, %v2121_v46  ;;  %v605_v38 = vmul.f32 %v2602_v6, %v497_v21  ;;  %v584_v57 = vadd.f32 %v582_v25, %v578_v40 }
 0x126   :  { %v547_v62 = vadd.f32 %v545_v13, %v541_v59  ;;  %v601_v54 = vadd.f32 %v599_v31, %v595_v16  ;;  %v509_v29 = vsel %vm170_vm15, %v507_v28, %v508_v15  ;;  %v536_v26 = vadd.f32 %v534_v49, %v530_v34 }
 0x127   :  { %v2603_v8 = vstv %s2595_s5  ;;  %v616_v58 = vstv %s2180_s3  ;;  %v590_v42 = vadd.f32 %v588_v53, %v584_v57  ;;  %v2606_v9 = vmov %v2594_v33 }
 0x128   :  { %v558_v10 = vmul.f32 %v2603_v8, %v2143_v14  ;;  %v553_v47 = vadd.f32 %v551_v55, %v547_v62  ;;  %v607_v36 = vadd.f32 %v605_v38, %v601_v54  ;;  %v542_v46 = vadd.f32 %v2605_v4, %v536_v26 }
 0x129   :  { %v546_v45 = vmul.f32 %v2606_v9, %v470_v18  ;;  %v2607_v3 = vmov %v2599_v20  ;;  %v2608_v41 = vstv %s2601_s25  ;;  %v596_v1 = vadd.f32 %v2609_v39, %v590_v42 }
 0x12a   :  { %v552_v50 = vmul.f32 %v2607_v3, %v500_v27  ;;  %v563_v32 = vmul.f32 %v2608_v41, %v509_v29  ;;  %v2610_v0 = vmov %v2598_v52  ;;  %v559_v7 = vadd.f32 %v2611_v63, %v553_v47 }
 0x12b   :  { %v600_v12 = vmul.f32 %v2610_v0, %v470_v18  ;;  %v613_v44 = vadd.f32 %v2612_v35, %v607_v36  ;;  %v548_v49 = vadd.f32 %v546_v45, %v542_v46  ;;  %v617_v37 = vmul.f32 %v616_v58, %v509_v29 }
 0x12c   :  { %v2613_v21 = vmov %v2602_v6  ;;  %v2614_v60 = vstv %s2604_s23  ;;  %v512_v17 = vsel %vm170_vm15, %v508_v15, 0.0  ;;  %v565_v11 = vadd.f32 %v563_v32, %v559_v7 }
 0x12d   :  { %v606_v48 = vmul.f32 %v2613_v21, %v500_v27  ;;  %v612_v24 = vmul.f32 %v2614_v60, %v2143_v14  ;;  %v602_v28 = vadd.f32 %v600_v12, %v596_v1  ;;  %v554_v22 = vadd.f32 %v552_v50, %v548_v49 }
 0x12e   :  { %v619_v23 = vadd.f32 %v617_v37, %v613_v44  ;;  %v2615_v18 = vmov %v2608_v41  ;;  %vm621_vm2 = vcmp.ge.f32.partialorder %v565_v11, 0.0  ;;  %v623_v33 = vmul.f32 0.01, %v565_v11 }
 0x12f   :  { %v608_v51 = vadd.f32 %v606_v48, %v602_v28  ;;  %v560_v5 = vadd.f32 %v558_v10, %v554_v22  ;;  %v564_v30 = vmul.f32 %v2615_v18, %v512_v17  ;;  %v618_v40 = vmul.f32 %v616_v58, %v512_v17 }
 0x130   :  { %v2229_v25 = vsel %vm621_vm2, %v565_v11, %v623_v33  ;;  %v629_v27 = vmul.f32 0.01, %v619_v23  ;;  %vm627_vm3 = vcmp.ge.f32.partialorder %v619_v23, 0.0  ;;  %v690_v10 = vstv %s2277_s1 }
 0x131   :  { %v614_v13 = vadd.f32 %v612_v24, %v608_v51  ;;  %v566_v56 = vadd.f32 %v564_v30, %v560_v5  ;;  %635 = vrot.lane.b32.xlu0 %v2229_v25, %s2616_s27  ;;  %v657_v43 = vrot.slane %v2229_v25, 7  ;;  %v677_v31 = vrot.slane %v2229_v25, 1 }
 0x132   :  { %v2236_v52 = vsel %vm627_vm3, %v619_v23, %v629_v27  ;;  %v634_v42 = vstv %s2618_s9  ;;  %v696_v36 = vstv %s2279_s30  ;;  %v702_v41 = vstv %s2281_s7 }
 0x133   :  { %v620_v59 = vadd.f32 %v618_v40, %v614_v13  ;;  %vm622_vm4 = vcmp.ge.f32.partialorder %v566_v56, 0.0  ;;  %v624_v14 = vmul.f32 0.01, %v566_v56  ;;  %v765_v6 = vrot.slane %v2236_v52, 7 }
 0x134   :  { %v785_v38 = vrot.slane %v2236_v52, 1  ;;  %v662_v46 = vsel %vm147_vm14, 0.0, %v657_v43  ;;  %v708_v12 = vstv %s2283_s13  ;;  %v714_v21 = vstv %s2288_s14 }
 0x135   :  { %vm628_vm5 = vcmp.ge.f32.partialorder %v620_v59, 0.0  ;;  %v630_v15 = vmul.f32 0.01, %v620_v59  ;;  %v2234_v16 = vsel %vm622_vm4, %v566_v56, %v624_v14  ;;  %641 = vrot.lane.b32.xlu0 %v2229_v25, %s2617_s28  ;;  %v697_v0 = vmul.f32 %v696_v36, %v662_v46 }
 0x136   :  { %637 = vrot.lane.b32.xlu1 %v2234_v16, %s2616_s27  ;;  %v658_v34 = vrot.slane %v2234_v16, 7  ;;  %v678_v20 = vrot.slane %v2234_v16, 1  ;;  %v720_v17 = vstv %s2290_s17  ;;  %v715_v18 = vmul.f32 %v714_v21, %v2229_v25 }
 0x137   :  { %v2245_v55 = vsel %vm628_vm5, %v620_v59, %v630_v15  ;;  %v726_v13 = vstv %s2305_s11  ;;  %v716_v46 = vmul.f32 %v714_v21, %v2234_v16  ;;  %v822_v2 = vstv %s2349_s12 }
 0x138   :  { %v766_v61 = vrot.slane %v2245_v55, 7  ;;  %v786_v53 = vrot.slane %v2245_v55, 1  ;;  %v659_v57 = vsel %vm147_vm14, %v657_v43, %v658_v34  ;;  %v2255_v62 = vsel %vm170_vm15, %v677_v31, %v678_v20 }
 0x139   :  { %743 = vrot.lane.b32.xlu0 %v2236_v52, %s2616_s27  ;;  %v698_v11 = vmul.f32 %v696_v36, %v659_v57 }
 0x13a   :  { %643 = vrot.lane.b32.xlu1 %v2234_v16, %s2617_s28  ;;  %v2264_v54 = vsel %vm147_vm14, %v765_v6, %v766_v61  ;;  %v2269_v29 = vsel %vm170_vm15, %v785_v38, %v786_v53  ;;  %v732_v61 = vstv %s2311_s15 }
 0x13d   :  { %749 = vrot.lane.b32.xlu0 %v2236_v52, %s2617_s28 }
 0x13e   :  { %745 = vrot.lane.b32.xlu1 %v2245_v55, %s2616_s27 }
 0x142   :  { %751 = vrot.lane.b32.xlu1 %v2245_v55, %s2617_s28 }
 0x1a3   :  { %v636_v26 = vpop.permute.xlu0 %635 }
 0x1a4   :  { %v639_v8 = vsel %vm1819_vm1, %v636_v26, 0.0 }
 0x1a5   :  { %v649_v58 = vrot.slane %v639_v8, 7  ;;  %v709_v24 = vmul.f32 %v708_v12, %v639_v8  ;;  %v671_v22 = vrot.slane %v639_v8, 1 }
 0x1a7   :  { %v654_v47 = vsel %vm147_vm14, 0.0, %v649_v58  ;;  %v642_v4 = vpop.permute.xlu0 %641 }
 0x1a8   :  { %v638_v9 = vpop.permute.xlu1 %637  ;;  %v691_v45 = vmul.f32 %v690_v10, %v654_v47  ;;  %v645_v3 = vsel %vm1815_vm0, %v642_v4, 0.0  ;;  %v798_v4 = vstv %s2318_s4 }
 0x1a9   :  { %v2302_v50 = vsel %vm1819_vm1, %v638_v9, 0.0  ;;  %v665_v32 = vrot.slane %v645_v3, 7  ;;  %v721_v15 = vmul.f32 %v720_v17, %v645_v3  ;;  %v683_v31 = vrot.slane %v645_v3, 1 }
 0x1aa   :  { %v650_v39 = vrot.slane %v2302_v50, 7  ;;  %v693_v1 = vadd.f32 %v691_v45, %v634_v42  ;;  %v672_v48 = vrot.slane %v2302_v50, 1  ;;  %v733_v9 = vmul.f32 %v732_v61, %v2255_v62 }
 0x1ab   :  { %v670_v63 = vsel %vm147_vm14, 0.0, %v665_v32  ;;  %v744_v35 = vpop.permute.xlu0 %743  ;;  %v682_v62 = vsel %vm170_vm15, %v678_v20, 0.0 }
 0x1ac   :  { %v651_v7 = vsel %vm147_vm14, %v649_v58, %v650_v39  ;;  %v699_v44 = vadd.f32 %v697_v0, %v693_v1  ;;  %v703_v49 = vmul.f32 %v702_v41, %v670_v63  ;;  %v644_v37 = vpop.permute.xlu1 %643  ;;  %v2325_v30 = vsel %vm1819_vm1, %v744_v35, 0.0 }
 0x1ad   :  { %v692_v60 = vmul.f32 %v690_v10, %v651_v7  ;;  %v646_v51 = vsel %vm1815_vm0, %v644_v37, 0.0  ;;  %v673_v40 = vsel %vm170_vm15, %v671_v22, %v672_v48  ;;  %v757_v34 = vrot.slane %v2325_v30, 7 }
 0x1ae   :  { %v705_v28 = vadd.f32 %v703_v49, %v699_v44  ;;  %v666_v33 = vrot.slane %v646_v51, 7  ;;  %v684_v56 = vrot.slane %v646_v51, 1  ;;  %v727_v26 = vmul.f32 %v726_v13, %v673_v40 }
 0x1af   :  { %v694_v23 = vadd.f32 %v692_v60, %v634_v42  ;;  %v750_v59 = vpop.permute.xlu0 %749  ;;  %v710_v10 = vmul.f32 %v708_v12, %v2302_v50  ;;  %v738_v58 = vstv %s2315_s19  ;;  %v762_v45 = vsel %vm147_vm14, 0.0, %v757_v34 }
 0x1b0   :  { %v711_v5 = vadd.f32 %v709_v24, %v705_v28  ;;  %v667_v43 = vsel %vm147_vm14, %v665_v32, %v666_v33  ;;  %v746_v25 = vpop.permute.xlu1 %745  ;;  %v2338_v8 = vsel %vm1815_vm0, %v750_v59, 0.0  ;;  %v685_v42 = vsel %vm170_vm15, %v683_v31, %v684_v56 }
 0x1b1   :  { %v700_v27 = vadd.f32 %v698_v11, %v694_v23  ;;  %v704_v38 = vmul.f32 %v702_v41, %v667_v43  ;;  %v773_v50 = vrot.slane %v2338_v8, 7  ;;  %v2354_v41 = vsel %vm1819_vm1, %v746_v25, 0.0 }
 0x1b2   :  { %v717_v14 = vadd.f32 %v715_v18, %v711_v5  ;;  %v676_v32 = vsel %vm170_vm15, %v672_v48, 0.0  ;;  %v739_v1 = vmul.f32 %v738_v58, %v685_v42  ;;  %v804_v0 = vstv %s2327_s6 }
 0x1b3   :  { %v706_v47 = vadd.f32 %v704_v38, %v700_v27  ;;  %v722_v7 = vmul.f32 %v720_v17, %v646_v51  ;;  %v770_v35 = vsel %vm147_vm14, 0.0, %v765_v6  ;;  %v799_v19 = vmul.f32 %v798_v4, %v762_v45 }
 0x1b4   :  { %v723_v57 = vadd.f32 %v721_v15, %v717_v14  ;;  %v752_v12 = vpop.permute.xlu1 %751  ;;  %v810_v49 = vstv %s2332_s8  ;;  %v758_v37 = vrot.slane %v2354_v41, 7  ;;  %v728_v21 = vmul.f32 %v726_v13, %v676_v32 }
 0x1b5   :  { %v712_v3 = vadd.f32 %v710_v10, %v706_v47  ;;  %v778_v20 = vsel %vm147_vm14, 0.0, %v773_v50  ;;  %v754_v48 = vsel %vm1815_vm0, %v752_v12, 0.0  ;;  %v688_v60 = vsel %vm170_vm15, %v684_v56, 0.0 }
 0x1b6   :  { %v729_v36 = vadd.f32 %v727_v26, %v723_v57  ;;  %v805_v6 = vmul.f32 %v804_v0, %v770_v35  ;;  %v816_v17 = vstv %s2341_s10  ;;  %v734_v22 = vmul.f32 %v732_v61, %v682_v62 }
 0x1b7   :  { %v718_v63 = vadd.f32 %v716_v46, %v712_v3  ;;  %v811_v23 = vmul.f32 %v810_v49, %v778_v20  ;;  %v759_v51 = vsel %vm147_vm14, %v757_v34, %v758_v37  ;;  %v774_v5 = vrot.slane %v754_v48, 7 }
 0x1b8   :  { %v735_v39 = vadd.f32 %v733_v9, %v729_v36  ;;  %v740_v33 = vmul.f32 %v738_v58, %v688_v60  ;;  %v780_v13 = vrot.slane %v2354_v41, 1  ;;  %v817_v40 = vmul.f32 %v816_v17, %v2325_v30 }
 0x1b9   :  { %v724_v16 = vadd.f32 %v722_v7, %v718_v63  ;;  %v779_v27 = vrot.slane %v2325_v30, 1  ;;  %v828_v14 = vstv %s2364_s16  ;;  %v800_v15 = vmul.f32 %v798_v4, %v759_v51 }
 0x1ba   :  { %v741_v44 = vadd.f32 %v739_v1, %v735_v39  ;;  %v823_v43 = vmul.f32 %v822_v2, %v2236_v52  ;;  %v834_v31 = vstv %s2367_s22  ;;  %v775_v34 = vsel %vm147_vm14, %v773_v50, %v774_v5 }
 0x1bb   :  { %v730_v28 = vadd.f32 %v728_v21, %v724_v16  ;;  %v806_v61 = vmul.f32 %v804_v0, %v2264_v54  ;;  %v781_v38 = vsel %vm170_vm15, %v779_v27, %v780_v13  ;;  %v792_v26 = vrot.slane %v754_v48, 1 }
 0x1bc   :  { %v801_v24 = vadd.f32 %v799_v19, %v741_v44  ;;  %v829_v58 = vmul.f32 %v828_v14, %v2338_v8  ;;  %v791_v30 = vrot.slane %v2338_v8, 1  ;;  %v840_v42 = vstv %s2375_s2 }
 0x1bd   :  { %v736_v18 = vadd.f32 %v734_v22, %v730_v28  ;;  %v812_v36 = vmul.f32 %v810_v49, %v775_v34  ;;  %v835_v4 = vmul.f32 %v834_v31, %v781_v38  ;;  %v818_v46 = vmul.f32 %v816_v17, %v2354_v41 }
 0x1be   :  { %v807_v11 = vadd.f32 %v805_v6, %v801_v24  ;;  %v846_v9 = vstv %s2380_s20  ;;  %v793_v45 = vsel %vm170_vm15, %v791_v30, %v792_v26  ;;  %v841_v50 = vmul.f32 %v840_v42, %v2269_v29 }
 0x1bf   :  { %v742_v59 = vadd.f32 %v740_v33, %v736_v18  ;;  %v824_v32 = vmul.f32 %v822_v2, %v2245_v55  ;;  %v784_v1 = vsel %vm170_vm15, %v780_v13, 0.0  ;;  %v847_v0 = vmul.f32 %v846_v9, %v793_v45 }
 0x1c0   :  { %v813_v56 = vadd.f32 %v811_v23, %v807_v11  ;;  %v830_v62 = vmul.f32 %v828_v14, %v754_v48  ;;  %v790_v41 = vsel %vm170_vm15, %v786_v53, 0.0  ;;  %v836_v7 = vmul.f32 %v834_v31, %v784_v1 }
 0x1c1   :  { %v802_v57 = vadd.f32 %v800_v15, %v742_v59  ;;  %v796_v19 = vsel %vm170_vm15, %v792_v26, 0.0  ;;  %v842_v29 = vmul.f32 %v840_v42, %v790_v41 }
 0x1c2   :  { %v819_v25 = vadd.f32 %v817_v40, %v813_v56  ;;  %v848_v16 = vmul.f32 %v846_v9, %v796_v19 }
 0x1c3   :  { %v808_v47 = vadd.f32 %v806_v61, %v802_v57 }
 0x1c4   :  { %v825_v10 = vadd.f32 %v823_v43, %v819_v25 }
 0x1c5   :  { %v814_v54 = vadd.f32 %v812_v36, %v808_v47 }
 0x1c6   :  { %v831_v52 = vadd.f32 %v829_v58, %v825_v10 }
 0x1c7   :  { %v820_v39 = vadd.f32 %v818_v46, %v814_v54 }
 0x1c8   :  { %v837_v3 = vadd.f32 %v835_v4, %v831_v52 }
 0x1c9   :  { %v826_v12 = vadd.f32 %v824_v32, %v820_v39 }
 0x1ca   :  { %v843_v8 = vadd.f32 %v841_v50, %v837_v3 }
 0x1cb   :  { %v832_v35 = vadd.f32 %v830_v62, %v826_v12 }
 0x1cc   :  { %v849_v63 = vadd.f32 %v847_v0, %v843_v8 }
 0x1cd   :  { %v838_v49 = vadd.f32 %v836_v7, %v832_v35 }
 0x1ce   :  { %v851_v44 = vmax.f32 %v849_v63, 1e-06 }
 0x1cf   :  { %v844_v21 = vadd.f32 %v842_v29, %v838_v49 }
 0x1d0   :  { %v853_v37 = vmin.f32 %v851_v44, 256.0 }
 0x1d1   :  { %v850_v48 = vadd.f32 %v848_v16, %v844_v21 }
 0x1d2   :  { %875 = vst [vmem:[#allocation12] sm:$0xff] %v853_v37  ;;  %895 = vst [vmem:[#allocation12 + $0x10] sm:$0xff] %v853_v37  ;;  %v1185_v20 = vand.u32 2147483647, %v853_v37 }
 0x1d3   :  { %915 = vst [vmem:[#allocation12 + $0x20] sm:$0xff] %v853_v37  ;;  %v852_v55 = vmax.f32 %v850_v48, 1e-06 }
 0x1d4   :  { %1279 = vlog2.f32 %v1185_v20 }
 0x1d5   :  { %v854_v53 = vmin.f32 %v852_v55, 256.0 }
 0x1d7   :  { %876 = vst [vmem:[#allocation12 + $0x8] sm:$0xff] %v854_v53  ;;  %896 = vst [vmem:[#allocation12 + $0x18] sm:$0xff] %v854_v53  ;;  %v1211_v60 = vand.u32 2147483647, %v854_v53 }
 0x1d8   :  { %916 = vst [vmem:[#allocation12 + $0x28] sm:$0xff] %v854_v53 }
 0x1d9   :  { %1374 = shalt.err (!%p1371_p13)
}
 0x1da   :  { %s2619_s5 = sld [smem:[#allocation41_spill]] }
 0x1e0   :  { %s1375_s25 = scalar_lea.hbm %s2619_s5, 768 }
 0x1e1   :  { %p1376_p0 = scmp.ne.s32.totalorder %s2619_s5, %s1375_s25  ;;  %p1379_p1 = scmp.lt.u32.totalorder %s1375_s25, %s2619_s5 }
 0x1e3   :  { %p1381_p2 = pnand %p1379_p1, %p1376_p0 }
 0x1e5   :  { %1384 = shalt.err (!%p1381_p2)
}
 0x1e6   :  { %s2620_s30 = smov 8   ;;  %s2621_s7 = smov 128   ;;  %1281 = vlog2.f32 %v1211_v60  ;;  %v1280_v6 = vpop.eup %1279  ;;  %vm1189_vm6 = vcmp.lt.f32.partialorder %v853_v37, 0  ;;  %vm1190_vm7 = vcmp.eq.f32.partialorder %v853_v37, 0  ;;  %vm1194_vm8 = vcmp.eq.f32.partialorder %v1185_v20, 2139095040  ;;  %v1299_v40 = vld [vmem:[#allocation10] sm:$0xff] }
 0x1e7   :  { %940 = dma.vmem_to_hbm [thread:$0]  %s935_s26, 768, %s2619_s5, [#allocation13], %s2621_s7, %s2621_s7, %s2620_s30   ;;  %v1187_v24 = vmul.f32 0.9, %v1280_v6  ;;  %vm1202_vm9 = vcmp.ne.f32.partialorder %v853_v37, %v853_v37  ;;  %vm1191_vm10 = vcmp.eq.f32.partialorder %v853_v37, 1065353216  ;;  %vm1215_vm11 = vcmp.lt.f32.partialorder %v854_v53, 0 }
 0x1e8   :  { %vm1216_vm12 = vcmp.eq.f32.partialorder %v854_v53, 0  ;;  %vm1220_vm13 = vcmp.eq.f32.partialorder %v1211_v60, 2139095040  ;;  %v1300_v59 = vld [vmem:[#allocation10 + $0x10] sm:$0xff]  ;;  %v1301_v15 = vld [vmem:[#allocation10 + $0x20] sm:$0xff]  ;;  %vm1228_vm14 = vcmp.ne.f32.partialorder %v854_v53, %v854_v53  ;;  %vm1217_vm15 = vcmp.eq.f32.partialorder %v854_v53, 1065353216  ;;  %v1302_v10 = vld [vmem:[#allocation10 + $0x8] sm:$0xff] }
 0x1e9   :  { %1283 = vpow2.f32 %v1187_v24  ;;  %v1303_v30 = vld [vmem:[#allocation10 + $0x18] sm:$0xff]  ;;  %v1304_v47 = vld [vmem:[#allocation10 + $0x28] sm:$0xff]  ;;  %s1426_s17 = smov [#allocation11]  }
 0x1ea   :  { %s922_s18 = sshll.u32 %s1426_s17, 4  ;;  %s923_s18 = int_to_ptr.vmem [resolvable:$true] %s922_s18 }
 0x1eb   :  { %s1385_s21 = scalar_lea.vmem %s923_s18, 768  ;;  %p1390_p4 = scmp.lt.s32.totalorder %s923_s18, %s923_s18 }
 0x1ec   :  { %p1386_p3 = scmp.ne.s32.totalorder %s923_s18, %s1385_s21  ;;  %p1391_p5 = scmp.lt.s32.totalorder %s1385_s21, %s1385_s21 }
 0x1ee   :  { %p1392_p6 = por %p1391_p5, %p1390_p4 }
 0x1f0   :  { %v1282_v17 = vpop.eup %1281  ;;  %p1393_p7 = pnand %p1392_p6, %p1386_p3 }
 0x1f1   :  { %v1213_v28 = vmul.f32 0.9, %v1282_v17 }
 0x1f3   :  { %1285 = vpow2.f32 %v1213_v28  ;;  %v1284_v22 = vpop.eup %1283 }
 0x1f4   :  { %v1195_v11 = vsel %vm1189_vm6, 2143289344, %v1284_v22 }
 0x1f5   :  { %v1196_v23 = vsel %vm1190_vm7, 0, %v1195_v11 }
 0x1f6   :  { %v1201_v51 = vsel %vm1194_vm8, 2139095040, %v1196_v23 }
 0x1f7   :  { %v1205_v5 = vsel %vm1202_vm9, 2143289344, %v1201_v51 }
 0x1f8   :  { %v1206_v18 = vsel %vm1191_vm10, 1065353216, %v1205_v5 }
 0x1f9   :  { %v1023_v33 = vadd.f32 -1.0, %v1206_v18  ;;  %v857_v52 = vmul.f32 %v1299_v40, %v1206_v18  ;;  %v877_v9 = vmul.f32 %v1300_v59, %v1206_v18  ;;  %v897_v54 = vmul.f32 %v1301_v15, %v1206_v18 }
 0x1fb   :  { %v863_v56 = vmul.f32 %v1299_v40, %v1023_v33  ;;  %v881_v14 = vmul.f32 %v1300_v59, %v1023_v33  ;;  %v901_v43 = vmul.f32 %v1301_v15, %v1023_v33  ;;  %v859_v3 = vmul.f32 1.6, %v857_v52 }
 0x1fc   :  { %v879_v32 = vmul.f32 1.6, %v877_v9  ;;  %v899_v8 = vmul.f32 1.6, %v897_v54 }
 0x1fd   :  { %v1286_v2 = vpop.eup %1285  ;;  %v865_v31 = vadd.f32 1.6, %v863_v56  ;;  %v883_v61 = vadd.f32 1.6, %v881_v14  ;;  %v903_v38 = vadd.f32 1.6, %v901_v43 }
 0x1fe   :  { %v1221_v13 = vsel %vm1215_vm11, 2143289344, %v1286_v2 }
 0x1ff   :  { %v1222_v27 = vsel %vm1216_vm12, 0, %v1221_v13  ;;  %1287 = vrcp.f32 %v865_v31 }
 0x200   :  { %v1227_v25 = vsel %vm1220_vm13, 2139095040, %v1222_v27  ;;  %1289 = vrcp.f32 %v883_v61 }
 0x201   :  { %v1231_v34 = vsel %vm1228_vm14, 2143289344, %v1227_v25  ;;  %1291 = vrcp.f32 %v903_v38 }
 0x202   :  { %v1232_v57 = vsel %vm1217_vm15, 1065353216, %v1231_v34 }
 0x203   :  { %v1024_v26 = vadd.f32 -1.0, %v1232_v57  ;;  %v858_v12 = vmul.f32 %v1302_v10, %v1232_v57  ;;  %v878_v63 = vmul.f32 %v1303_v30, %v1232_v57  ;;  %v898_v19 = vmul.f32 %v1304_v47, %v1232_v57 }
 0x205   :  { %v864_v58 = vmul.f32 %v1302_v10, %v1024_v26  ;;  %v882_v42 = vmul.f32 %v1303_v30, %v1024_v26  ;;  %v902_v36 = vmul.f32 %v1304_v47, %v1024_v26  ;;  %v860_v29 = vmul.f32 1.6, %v858_v12 }
 0x206   :  { %v880_v37 = vmul.f32 1.6, %v878_v63  ;;  %v900_v20 = vmul.f32 1.6, %v898_v19 }
 0x207   :  { %v866_v4 = vadd.f32 1.6, %v864_v58  ;;  %v884_v46 = vadd.f32 1.6, %v882_v42  ;;  %v904_v45 = vadd.f32 1.6, %v902_v36 }
 0x209   :  { %1293 = vrcp.f32 %v866_v4  ;;  %v1288_v50 = vpop.eup %1287 }
 0x20a   :  { %1295 = vrcp.f32 %v884_v46  ;;  %v1290_v39 = vpop.eup %1289  ;;  %v869_v1 = vmul.f32 %v1288_v50, %v859_v3 }
 0x20b   :  { %1297 = vrcp.f32 %v904_v45  ;;  %v1292_v0 = vpop.eup %1291  ;;  %v887_v62 = vmul.f32 %v1290_v39, %v879_v32 }
 0x20c   :  { %v871_v41 = vmin.f32 %v869_v1, 1.0  ;;  %v907_v7 = vmul.f32 %v1292_v0, %v899_v8 }
 0x20d   :  { %v889_v35 = vmin.f32 %v887_v62, 1.0 }
 0x20e   :  { %873 = vst [vmem:[#allocation11] sm:$0xff] %v871_v41  ;;  %v909_v44 = vmin.f32 %v907_v7, 1.0 }
 0x20f   :  { %892 = vst [vmem:[#allocation11 + $0x10] sm:$0xff] %v889_v35 }
 0x210   :  { %912 = vst [vmem:[#allocation11 + $0x20] sm:$0xff] %v909_v44 }
 0x213   :  { %v1294_v49 = vpop.eup %1293 }
 0x214   :  { %v1296_v21 = vpop.eup %1295  ;;  %v870_v16 = vmul.f32 %v1294_v49, %v860_v29 }
 0x215   :  { %v1298_v48 = vpop.eup %1297  ;;  %v888_v55 = vmul.f32 %v1296_v21, %v880_v37 }
 0x216   :  { %v872_v53 = vmin.f32 %v870_v16, 1.0  ;;  %v908_v60 = vmul.f32 %v1298_v48, %v900_v20 }
 0x217   :  { %v890_v6 = vmin.f32 %v888_v55, 1.0 }
 0x218   :  { %874 = vst [vmem:[#allocation11 + $0x8] sm:$0xff] %v872_v53  ;;  %v910_v24 = vmin.f32 %v908_v60, 1.0 }
 0x219   :  { %893 = vst [vmem:[#allocation11 + $0x18] sm:$0xff] %v890_v6 }
 0x21a   :  { %913 = vst [vmem:[#allocation11 + $0x28] sm:$0xff] %v910_v24 }
 0x21b   :  { %1396 = shalt.err (!%p1393_p7)
}
 0x21c   :  { %s2622_s15 = sld [smem:[#allocation40_spill]] }
 0x222   :  { %s1397_s19 = scalar_lea.hbm %s2622_s15, 768 }
 0x223   :  { %p1398_p8 = scmp.ne.s32.totalorder %s2622_s15, %s1397_s19  ;;  %p1401_p9 = scmp.lt.u32.totalorder %s1397_s19, %s2622_s15 }
 0x225   :  { %p1403_p10 = pnand %p1401_p9, %p1398_p8 }
 0x227   :  { %1406 = shalt.err (!%p1403_p10)
}
 0x228   :  { %928 = dma.vmem_to_hbm [thread:$0]  %s923_s18, 768, %s2622_s15, [#allocation5], %s2621_s7, %s2621_s7, %s2620_s30  }
 0x229   :  { %1413 = dma.done.wait [#allocation5], 768  }
 0x22a   :  { %1414 = vsyncadd [#allocation5], 4294966528 }
 0x22b   :  { %1415 = dma.done.wait [#allocation13], 768  }
 0x22c   :  { %1416 = vsyncadd [#allocation13], 4294966528 }
 0x22d   :  { %947 = vsyncpa [#allocation4], 1 }
 0x22e   :  { %948 = vsyncpa [#allocation5], 1 }
 0x22f   :  { %949 = vsyncpa [#allocation13], 1 }
 0x230   :  { %950 = vsyncpa [#allocation6], 1 }
 0x231   :  { %951 = vsyncpa [#allocation8], 1 }

</bundles_post_ra>
